<compile_context>
chip_gen: v7x
topology: tpu7x:2x2x1
jax: 0.10.0
libtpu: 0.0.40
codegen_flags: <defaults>
</compile_context>

<pallas_src>
import functools

import jax
import jax.numpy as jnp
from jax.experimental import pallas as pl
from jax.experimental.pallas import tpu as pltpu

EPS = 1e-5
PAD_B = 8  # sublane-padded batch rows used inside the recurrence


# ----------------------------------------------------------------------------
# Slab layouts (shared by the offline packer and the kernel)
# ----------------------------------------------------------------------------
def _slab_width(H):
    return max(8 * H, 128)


def weight_layout(D, H):
    entries = (
        ("w_ih0",   2 * D, 8 * H),   # layer-0 fwd+rev input weight, block-diag, gate-grouped
        ("w_hh0",   2 * H, 8 * H),   # layer-0 fwd+rev hidden weight, block-diag, gate-grouped
        ("w_ih_f1", 2 * H, 4 * H),   # layer-1 fwd input weight,  gates [i|f|o|g]
        ("w_hh_f1", H,     4 * H),   # layer-1 fwd hidden weight, gates [i|f|o|g]
        ("w_ih_r1", 2 * H, 4 * H),   # layer-1 rev input weight (hidden weight never needed)
        ("fc_w",    2 * H, D),
        ("nw1",     D,     128),
        ("nw2",     128,   128),
        ("nw3",     128,   D),
        ("pw1",     D,     D),
        ("pw2",     D,     D),
    )
    layout, off = {}, 0
    for name, r, c in entries:
        layout[name] = (off, r, c)
        off += r
    return layout, off


def bias_layout(D, H):
    entries = (
        ("b_l0", 8 * H), ("b_f1", 4 * H), ("b_r1", 4 * H), ("fc_b", D),
        ("nb1", 128), ("ng1", 128), ("nbe1", 128),
        ("nb2", 128), ("ng2", 128), ("nbe2", 128), ("nb3", D),
        ("pb1", D), ("pg1", D), ("pbe1", D), ("pb2", D),
    )
    layout = {name: (i, c) for i, (name, c) in enumerate(entries)}
    rows = ((len(entries) + 7) // 8) * 8
    return layout, rows


# ----------------------------------------------------------------------------
# In-kernel helper: BatchNorm1d (training-mode batch stats) + optional ReLU
# ----------------------------------------------------------------------------
def _bn_relu(h, gamma, beta, relu=True):
    mean = jnp.mean(h, axis=0, keepdims=True)
    var = jnp.mean((h - mean) ** 2, axis=0, keepdims=True)
    hn = (h - mean) * jax.lax.rsqrt(var + EPS) * gamma + beta
    return jnp.maximum(hn, 0.0) if relu else hn


# ----------------------------------------------------------------------------
# Single fused kernel: net(u) + f(x) -> phi(.)
# ----------------------------------------------------------------------------
def qnn_kernel(data_ref, w_ref, b_ref, o_ref, l0f_buf, l0r_buf,
               *, T, B, D, H, wl, bl):
    f32 = jnp.float32
    dot = functools.partial(jnp.dot, preferred_element_type=f32)

    def W(name, r0=None, r1=None):
        off, r, c = wl[name]
        if r0 is None:
            r0, r1 = 0, r
        return w_ref[off + r0:off + r1, 0:c]

    def Bv(name):
        row, c = bl[name]
        return b_ref[row:row + 1, 0:c]

    # ---- carve the data slab -----------------------------------------------
    x_pair = data_ref[0:T * PAD_B, :]                   # (T*8, 2D): row t*8+b = [x_t | x_{T-1-t}]
    u = data_ref[T * PAD_B:T * PAD_B + B, 0:D]          # (B, D)

    # ===== self.net MLP (BN stats over the B real rows only) =================
    h = dot(u, W("nw1")) + Bv("nb1")
    h = _bn_relu(h, Bv("ng1"), Bv("nbe1"))
    h = dot(h, W("nw2")) + Bv("nb2")
    h = _bn_relu(h, Bv("ng2"), Bv("nbe2"))
    net_out = dot(h, W("nw3")) + Bv("nb3")              # (B, D)

    # ===== self.f : 2-layer bidirectional LSTM + fc(out[:, -1, :]) ===========
    # Layer 0: fwd + rev fused into one block-diagonal recurrence.
    # Gate lane layout (width 8H): [i_f i_r | f_f f_r | o_f o_r | g_f g_r].
    proj0 = dot(x_pair, W("w_ih0")) + Bv("b_l0")        # (T*8, 8H), hoisted input projection
    w_hh0 = W("w_hh0")                                  # (2H, 8H)

    h_comb = c_comb = None
    for t in range(T):
        tr = T - 1 - t
        g_in = proj0[t * PAD_B:(t + 1) * PAD_B, :]      # (8, 8H)
        gates = g_in if t == 0 else g_in + dot(h_comb, w_hh0)
        sig = jax.nn.sigmoid(gates[:, 0:6 * H])         # [i|f|o] of both dirs, one slice
        g_t = jnp.tanh(gates[:, 6 * H:8 * H])           # [g]     of both dirs
        i_g = sig[:, 0:2 * H]
        o_g = sig[:, 4 * H:6 * H]
        c_comb = i_g * g_t if t == 0 else sig[:, 2 * H:4 * H] * c_comb + i_g * g_t
        h_comb = o_g * jnp.tanh(c_comb)                 # (8, 2H) = [h_f(t) | h_r(tr)]
        # Scatter into time-consistent layer-0 output buffers (aligned (8,H) rows).
        l0f_buf[t * PAD_B:(t + 1) * PAD_B, :] = h_comb[:, 0:H]
        l0r_buf[tr * PAD_B:(tr + 1) * PAD_B, :] = h_comb[:, H:2 * H]

    # Layer 1 forward: hoisted input projection over all time steps.
    proj1 = (dot(l0f_buf[...], W("w_ih_f1", 0, H))
             + dot(l0r_buf[...], W("w_ih_f1", H, 2 * H))
             + Bv("b_f1"))                              # (T*8, 4H), gates [i|f|o|g]
    w_hh1 = W("w_hh_f1")

    h1 = c1 = None
    for t in range(T):
        g_in = proj1[t * PAD_B:(t + 1) * PAD_B, :]
        gates = g_in if t == 0 else g_in + dot(h1, w_hh1)
        sig = jax.nn.sigmoid(gates[:, 0:3 * H])
        g_t = jnp.tanh(gates[:, 3 * H:4 * H])
        i_g = sig[:, 0:H]
        o_g = sig[:, 2 * H:3 * H]
        c1 = i_g * g_t if t == 0 else sig[:, H:2 * H] * c1 + i_g * g_t
        h1 = o_g * jnp.tanh(c1)

    # Layer 1 reverse: fc only consumes out[:, -1, :], i.e. the FIRST reverse
    # step from a zero state -> no hidden matmul and no forget term needed.
    g_r = (dot(l0f_buf[(T - 1) * PAD_B:T * PAD_B, :], W("w_ih_r1", 0, H))
           + dot(l0r_buf[(T - 1) * PAD_B:T * PAD_B, :], W("w_ih_r1", H, 2 * H))
           + Bv("b_r1"))
    sig = jax.nn.sigmoid(g_r[:, 0:3 * H])
    c1r = sig[:, 0:H] * jnp.tanh(g_r[:, 3 * H:4 * H])
    h1r = sig[:, 2 * H:3 * H] * jnp.tanh(c1r)

    # fc on concat(h1, h1r): two half-matmuls avoid the lane concat.
    f_out = dot(h1, W("fc_w", 0, H)) + dot(h1r, W("fc_w", H, 2 * H)) + Bv("fc_b")

    # ===== self.phi ===========================================================
    s = net_out + f_out[0:B, :]                         # drop the padded rows
    ph = dot(s, W("pw1")) + Bv("pb1")
    ph = _bn_relu(ph, Bv("pg1"), Bv("pbe1"))
    o_ref[...] = dot(ph, W("pw2")) + Bv("pb2")


# ----------------------------------------------------------------------------
# Wrapper: one pallas_call, 3 input slabs + 1 output, everything in VMEM
# ----------------------------------------------------------------------------
def qnn_forward(data, wslab, bslab, *, T, B, D, H):
    wl, _ = weight_layout(D, H)
    bl, _ = bias_layout(D, H)
    kernel = functools.partial(qnn_kernel, T=T, B=B, D=D, H=H, wl=wl, bl=bl)
    # TODO(synk): for multiple independent (u, x) instances on v7x, add a
    # leading grid axis over instances with dimension_semantics=("parallel",)
    # to use both TensorCores (never split this batch: BN stats are global).
    return pl.pallas_call(
        kernel,
        out_shape=jax.ShapeDtypeStruct((B, D), jnp.float32),
        in_specs=[pl.BlockSpec(memory_space=pltpu.MemorySpace.VMEM)] * 3,
        out_specs=pl.BlockSpec(memory_space=pltpu.MemorySpace.VMEM),
        scratch_shapes=[pltpu.VMEM((T * PAD_B, H), jnp.float32),
                        pltpu.VMEM((T * PAD_B, H), jnp.float32)],
    )(data, wslab, bslab)


# ----------------------------------------------------------------------------
# One-time data prep: pad batch to 8 sublanes and pre-pair [x_t | x_{T-1-t}]
# ----------------------------------------------------------------------------
def prepare_data(u, x):
    B, T, D = x.shape
    assert B <= PAD_B, "batch must fit the 8-sublane padding"
    xf = jnp.transpose(x, (1, 0, 2))                        # (T, B, D)
    xr = jnp.flip(xf, axis=0)                               # time-reversed
    pair = jnp.concatenate([xf, xr], axis=-1)               # (T, B, 2D)
    pair = jnp.pad(pair, ((0, 0), (0, PAD_B - B), (0, 0)))  # (T, 8, 2D)
    x_rows = pair.reshape(T * PAD_B, 2 * D)
    u_rows = jnp.pad(u, ((0, PAD_B - B), (0, D)))           # (8, 2D), u in first D lanes
    return jnp.concatenate([x_rows, u_rows], axis=0).astype(jnp.float32)


# ----------------------------------------------------------------------------
# One-time weight repacking into the two slabs
# ----------------------------------------------------------------------------
def _gate_perm(w, H):
    """Reorder last-dim gate blocks from [i,f,g,o] (PyTorch) to [i,f,o,g]."""
    return jnp.concatenate(
        [w[..., 0:H], w[..., H:2 * H], w[..., 3 * H:4 * H], w[..., 2 * H:3 * H]], axis=-1)


def _bidir_blockdiag(w_f, w_r, H):
    """Block-diagonal fwd/rev weight with gate-grouped columns
    [i_f i_r | f_f f_r | o_f o_r | g_f g_r] (inputs stored as [i,f,g,o])."""
    def blocks(w):
        return [w[:, 0:H], w[:, H:2 * H], w[:, 3 * H:4 * H], w[:, 2 * H:3 * H]]  # i,f,o,g
    bf, br = blocks(w_f), blocks(w_r)
    zf, zr = jnp.zeros_like(bf[0]), jnp.zeros_like(br[0])
    top = jnp.concatenate([bf[0], zf, bf[1], zf, bf[2], zf, bf[3], zf], axis=1)
    bot = jnp.concatenate([zr, br[0], zr, br[1], zr, br[2], zr, br[3]], axis=1)
    return jnp.concatenate([top, bot], axis=0)


def _bidir_bias(b_f, b_r, H):
    def blocks(b):
        return [b[:, 0:H], b[:, H:2 * H], b[:, 3 * H:4 * H], b[:, 2 * H:3 * H]]  # i,f,o,g
    bf, br = blocks(b_f), blocks(b_r)
    return jnp.concatenate([bf[0], br[0], bf[1], br[1], bf[2], br[2], bf[3], br[3]], axis=1)


def pack_params(params, D, H):
    assert D % 8 == 0 and H % 8 == 0
    pn, pf, pp = params["net"], params["f"], params["phi"]
    w_entries = {
        "w_ih0":   _bidir_blockdiag(pf["w_ih_f0"], pf["w_ih_r0"], H),
        "w_hh0":   _bidir_blockdiag(pf["w_hh_f0"], pf["w_hh_r0"], H),
        "w_ih_f1": _gate_perm(pf["w_ih_f1"], H),
        "w_hh_f1": _gate_perm(pf["w_hh_f1"], H),
        "w_ih_r1": _gate_perm(pf["w_ih_r1"], H),   # W_hh_r1 never needed (zero-state shortcut)
        "fc_w":    pf["fc_w"],
        "nw1": pn["w1"], "nw2": pn["w2"], "nw3": pn["w3"],
        "pw1": pp["w1"], "pw2": pp["w2"],
    }
    b_entries = {
        "b_l0": _bidir_bias(pf["b_f0"], pf["b_r0"], H),
        "b_f1": _gate_perm(pf["b_f1"], H),
        "b_r1": _gate_perm(pf["b_r1"], H),
        "fc_b": pf["fc_b"],
        "nb1": pn["b1"], "ng1": pn["g1"], "nbe1": pn["be1"],
        "nb2": pn["b2"], "ng2": pn["g2"], "nbe2": pn["be2"], "nb3": pn["b3"],
        "pb1": pp["b1"], "pg1": pp["g1"], "pbe1": pp["be1"], "pb2": pp["b2"],
    }
    width = _slab_width(H)
    wl, wrows = weight_layout(D, H)
    bl, brows = bias_layout(D, H)
    wslab = jnp.zeros((wrows, width), jnp.float32)
    for name, (off, r, c) in wl.items():
        arr = w_entries[name].astype(jnp.float32)
        assert arr.shape == (r, c), (name, arr.shape, (r, c))
        wslab = wslab.at[off:off + r, 0:c].set(arr)
    bslab = jnp.zeros((brows, width), jnp.float32)
    for name, (row, c) in bl.items():
        arr = b_entries[name].astype(jnp.float32)
        assert arr.shape == (1, c), (name, arr.shape, (1, c))
        bslab = bslab.at[row:row + 1, 0:c].set(arr)
    return wslab, bslab


# ----------------------------------------------------------------------------
# Deterministic parameter initialization (PyTorch-style shapes, transposed
# so kernels compute x @ W; LSTM gate column order [i, f, g, o])
# ----------------------------------------------------------------------------
def _uniform(key, shape, scale):
    return jax.random.uniform(key, shape, jnp.float32, -scale, scale)


def init_params(key, D, H):
    ks = iter(jax.random.split(key, 64))

    def linear(k_in, k_out):
        s = 1.0 / jnp.sqrt(k_in)
        w = _uniform(next(ks), (k_in, k_out), s)
        b = _uniform(next(ks), (1, k_out), s)
        return w, b

    # ---- self.net
    w1, b1 = linear(D, 128)
    w2, b2 = linear(128, 128)
    w3, b3 = linear(128, D)
    net = dict(w1=w1, b1=b1, g1=jnp.ones((1, 128)), be1=jnp.zeros((1, 128)),
               w2=w2, b2=b2, g2=jnp.ones((1, 128)), be2=jnp.zeros((1, 128)),
               w3=w3, b3=b3)

    # ---- self.f (BiRNN): 2 layers x 2 directions
    def lstm_dir(in_sz):
        s = 1.0 / jnp.sqrt(H)
        w_ih = _uniform(next(ks), (in_sz, 4 * H), s)
        w_hh = _uniform(next(ks), (H, 4 * H), s)
        b_ih = _uniform(next(ks), (1, 4 * H), s)
        b_hh = _uniform(next(ks), (1, 4 * H), s)
        return w_ih, w_hh, b_ih + b_hh                    # fold the two biases

    w_ih_f0, w_hh_f0, b_f0 = lstm_dir(D)
    w_ih_r0, w_hh_r0, b_r0 = lstm_dir(D)
    w_ih_f1, w_hh_f1, b_f1 = lstm_dir(2 * H)
    w_ih_r1, w_hh_r1, b_r1 = lstm_dir(2 * H)
    fc_w, fc_b = linear(2 * H, D)
    f = dict(w_ih_f0=w_ih_f0, w_hh_f0=w_hh_f0, b_f0=b_f0,
             w_ih_r0=w_ih_r0, w_hh_r0=w_hh_r0, b_r0=b_r0,
             w_ih_f1=w_ih_f1, w_hh_f1=w_hh_f1, b_f1=b_f1,
             w_ih_r1=w_ih_r1, w_hh_r1=w_hh_r1, b_r1=b_r1,
             fc_w=fc_w, fc_b=fc_b)

    # ---- self.phi
    pw1, pb1 = linear(D, D)
    pw2, pb2 = linear(D, D)
    phi = dict(w1=pw1, b1=pb1, g1=jnp.ones((1, D)), be1=jnp.zeros((1, D)),
               w2=pw2, b2=pb2)

    return dict(net=net, f=f, phi=phi)


# ----------------------------------------------------------------------------
# Pure-JAX reference (mirrors the PyTorch forward) for the correctness check
# ----------------------------------------------------------------------------
def _bn_relu_ref(h, g, b, relu=True):
    mean = h.mean(0, keepdims=True)
    var = ((h - mean) ** 2).mean(0, keepdims=True)
    hn = (h - mean) / jnp.sqrt(var + EPS) * g + b
    return jnp.maximum(hn, 0.0) if relu else hn


def _net_ref(u, p):
    h = _bn_relu_ref(u @ p["w1"] + p["b1"], p["g1"], p["be1"])
    h = _bn_relu_ref(h @ p["w2"] + p["b2"], p["g2"], p["be2"])
    return h @ p["w3"] + p["b3"]


def _birnn_ref(x, p, H):
    B, T, D = x.shape

    def run_dir(seq, w_ih, w_hh, b):
        h = jnp.zeros((B, H)); c = jnp.zeros((B, H)); outs = []
        for x_t in seq:
            gates = x_t @ w_ih + h @ w_hh + b
            i = jax.nn.sigmoid(gates[:, :H]); f = jax.nn.sigmoid(gates[:, H:2 * H])
            g = jnp.tanh(gates[:, 2 * H:3 * H]); o = jax.nn.sigmoid(gates[:, 3 * H:])
            c = f * c + i * g; h = o * jnp.tanh(c)
            outs.append(h)
        return outs

    seq0 = [x[:, t, :] for t in range(T)]
    f0 = run_dir(seq0, p["w_ih_f0"], p["w_hh_f0"], p["b_f0"])
    r0 = run_dir(seq0[::-1], p["w_ih_r0"], p["w_hh_r0"], p["b_r0"])[::-1]
    seq1 = [jnp.concatenate([f0[t], r0[t]], -1) for t in range(T)]
    f1 = run_dir(seq1, p["w_ih_f1"], p["w_hh_f1"], p["b_f1"])
    r1 = run_dir(seq1[::-1], p["w_ih_r1"], p["w_hh_r1"], p["b_r1"])[::-1]
    last = jnp.concatenate([f1[-1], r1[-1]], -1)
    return last @ p["fc_w"] + p["fc_b"]


def _phi_ref(a, p):
    h = _bn_relu_ref(a @ p["w1"] + p["b1"], p["g1"], p["be1"])
    return h @ p["w2"] + p["b2"]


def qnn_forward_ref(u, x, params, H):
    out = _net_ref(u, params["net"]) + _birnn_ref(x, params["f"], H)
    return _phi_ref(out, params["phi"])


# ----------------------------------------------------------------------------
if __name__ == "__main__":
    B, T, D = 4, 8, 8          # batch, sequence length, args.dims
    H = 4 * D                  # BiRNN hidden size = args.dims * 4

    key = jax.random.PRNGKey(0)
    k_u, k_x, k_p = jax.random.split(key, 3)
    u = jax.random.normal(k_u, (B, D), jnp.float32)
    x = jax.random.normal(k_x, (B, T, D), jnp.float32)
    params = init_params(k_p, D, H)

    wslab, bslab = pack_params(params, D, H)   # one-time repack -> 2 weight DMAs
    data = prepare_data(u, x)                  # one-time padded time-major data slab

    fwd = jax.jit(functools.partial(qnn_forward, T=T, B=B, D=D, H=H))
    out = jax.block_until_ready(fwd(data, wslab, bslab))

    ref = jax.block_until_ready(qnn_forward_ref(u, x, params, H))
    max_err = float(jnp.max(jnp.abs(out - ref)))
    assert out.shape == (B, D)
    assert max_err < 2e-2, f"mismatch vs reference: {max_err}"

    print("KERNEL_OK")
</pallas_src>

<mosaic_0001>
module attributes {stable_mosaic.version = 11 : i64} {
  func.func @qnn_kernel(%arg0: memref<72x16xf32, #tpu.memory_space<vmem>>, %arg1: memref<584x256xf32, #tpu.memory_space<vmem>>, %arg2: memref<16x256xf32, #tpu.memory_space<vmem>>, %arg3: memref<4x8xf32, #tpu.memory_space<vmem>>, %arg4: memref<64x32xf32, #tpu.memory_space<vmem>>, %arg5: memref<64x32xf32, #tpu.memory_space<vmem>>) attributes {dimension_semantics = [], scalar_prefetch = 0 : i64, scratch_operands = 2 : i64, tpu.core_type = #tpu.core_type<tc>} {
    %c0 = arith.constant 0 : index
    %c0_0 = arith.constant 0 : index
    %0 = vector.load %arg0[%c0, %c0_0] : memref<72x16xf32, #tpu.memory_space<vmem>>, vector<64x16xf32>
    %c64 = arith.constant 64 : index
    %c0_1 = arith.constant 0 : index
    %1 = vector.load %arg0[%c64, %c0_1] : memref<72x16xf32, #tpu.memory_space<vmem>>, vector<4x8xf32>
    %c304 = arith.constant 304 : index
    %c0_2 = arith.constant 0 : index
    %2 = vector.load %arg1[%c304, %c0_2] : memref<584x256xf32, #tpu.memory_space<vmem>>, vector<8x128xf32>
    %cst = arith.constant dense<0.000000e+00> : vector<4x128xf32>
    %3 = tpu.matmul %1, %2, %cst {dimension_numbers = #tpu.dot_dimension_numbers<[1], [0], [0], [1], [0, 0, 1, 1], [], []>} : vector<4x8xf32>, vector<8x128xf32>, vector<4x128xf32> -> vector<4x128xf32>
    %c4 = arith.constant 4 : index
    %c0_3 = arith.constant 0 : index
    %4 = vector.load %arg2[%c4, %c0_3] : memref<16x256xf32, #tpu.memory_space<vmem>>, vector<1x128xf32>
    %5 = vector.broadcast %4 : vector<1x128xf32> to vector<4x128xf32>
    %6 = arith.addf %3, %5 : vector<4x128xf32>
    %c5 = arith.constant 5 : index
    %c0_4 = arith.constant 0 : index
    %7 = vector.load %arg2[%c5, %c0_4] : memref<16x256xf32, #tpu.memory_space<vmem>>, vector<1x128xf32>
    %c6 = arith.constant 6 : index
    %c0_5 = arith.constant 0 : index
    %8 = vector.load %arg2[%c6, %c0_5] : memref<16x256xf32, #tpu.memory_space<vmem>>, vector<1x128xf32>
    %cst_6 = arith.constant dense<0.000000e+00> : vector<128xf32>
    %9 = vector.multi_reduction <add>, %6, %cst_6 [0] : vector<4x128xf32> to vector<128xf32>
    %10 = vector.shape_cast %9 : vector<128xf32> to vector<1x128xf32>
    %cst_7 = arith.constant 4.000000e+00 : f32
    %11 = vector.broadcast %cst_7 : f32 to vector<1x128xf32>
    %12 = arith.divf %10, %11 : vector<1x128xf32>
    %13 = vector.broadcast %12 : vector<1x128xf32> to vector<4x128xf32>
    %14 = arith.subf %6, %13 : vector<4x128xf32>
    %15 = arith.mulf %14, %14 : vector<4x128xf32>
    %cst_8 = arith.constant dense<0.000000e+00> : vector<128xf32>
    %16 = vector.multi_reduction <add>, %15, %cst_8 [0] : vector<4x128xf32> to vector<128xf32>
    %17 = vector.shape_cast %16 : vector<128xf32> to vector<1x128xf32>
    %cst_9 = arith.constant 4.000000e+00 : f32
    %18 = vector.broadcast %cst_9 : f32 to vector<1x128xf32>
    %19 = arith.divf %17, %18 : vector<1x128xf32>
    %20 = vector.broadcast %12 : vector<1x128xf32> to vector<4x128xf32>
    %21 = arith.subf %6, %20 : vector<4x128xf32>
    %cst_10 = arith.constant 9.99999974E-6 : f32
    %22 = vector.broadcast %cst_10 : f32 to vector<1x128xf32>
    %23 = arith.addf %19, %22 : vector<1x128xf32>
    %24 = math.rsqrt %23 : vector<1x128xf32>
    %25 = vector.broadcast %24 : vector<1x128xf32> to vector<4x128xf32>
    %26 = arith.mulf %21, %25 : vector<4x128xf32>
    %27 = vector.broadcast %7 : vector<1x128xf32> to vector<4x128xf32>
    %28 = arith.mulf %26, %27 : vector<4x128xf32>
    %29 = vector.broadcast %8 : vector<1x128xf32> to vector<4x128xf32>
    %30 = arith.addf %28, %29 : vector<4x128xf32>
    %cst_11 = arith.constant 0.000000e+00 : f32
    %31 = vector.broadcast %cst_11 : f32 to vector<4x128xf32>
    %32 = arith.maximumf %30, %31 : vector<4x128xf32>
    %c312 = arith.constant 312 : index
    %c0_12 = arith.constant 0 : index
    %33 = vector.load %arg1[%c312, %c0_12] : memref<584x256xf32, #tpu.memory_space<vmem>>, vector<128x128xf32>
    %cst_13 = arith.constant dense<0.000000e+00> : vector<4x128xf32>
    %34 = tpu.matmul %32, %33, %cst_13 {dimension_numbers = #tpu.dot_dimension_numbers<[1], [0], [0], [1], [0, 0, 1, 1], [], []>} : vector<4x128xf32>, vector<128x128xf32>, vector<4x128xf32> -> vector<4x128xf32>
    %c7 = arith.constant 7 : index
    %c0_14 = arith.constant 0 : index
    %35 = vector.load %arg2[%c7, %c0_14] : memref<16x256xf32, #tpu.memory_space<vmem>>, vector<1x128xf32>
    %36 = vector.broadcast %35 : vector<1x128xf32> to vector<4x128xf32>
    %37 = arith.addf %34, %36 : vector<4x128xf32>
    %c8 = arith.constant 8 : index
    %c0_15 = arith.constant 0 : index
    %38 = vector.load %arg2[%c8, %c0_15] : memref<16x256xf32, #tpu.memory_space<vmem>>, vector<1x128xf32>
    %c9 = arith.constant 9 : index
    %c0_16 = arith.constant 0 : index
    %39 = vector.load %arg2[%c9, %c0_16] : memref<16x256xf32, #tpu.memory_space<vmem>>, vector<1x128xf32>
    %cst_17 = arith.constant dense<0.000000e+00> : vector<128xf32>
    %40 = vector.multi_reduction <add>, %37, %cst_17 [0] : vector<4x128xf32> to vector<128xf32>
    %41 = vector.shape_cast %40 : vector<128xf32> to vector<1x128xf32>
    %cst_18 = arith.constant 4.000000e+00 : f32
    %42 = vector.broadcast %cst_18 : f32 to vector<1x128xf32>
    %43 = arith.divf %41, %42 : vector<1x128xf32>
    %44 = vector.broadcast %43 : vector<1x128xf32> to vector<4x128xf32>
    %45 = arith.subf %37, %44 : vector<4x128xf32>
    %46 = arith.mulf %45, %45 : vector<4x128xf32>
    %cst_19 = arith.constant dense<0.000000e+00> : vector<128xf32>
    %47 = vector.multi_reduction <add>, %46, %cst_19 [0] : vector<4x128xf32> to vector<128xf32>
    %48 = vector.shape_cast %47 : vector<128xf32> to vector<1x128xf32>
    %cst_20 = arith.constant 4.000000e+00 : f32
    %49 = vector.broadcast %cst_20 : f32 to vector<1x128xf32>
    %50 = arith.divf %48, %49 : vector<1x128xf32>
    %51 = vector.broadcast %43 : vector<1x128xf32> to vector<4x128xf32>
    %52 = arith.subf %37, %51 : vector<4x128xf32>
    %cst_21 = arith.constant 9.99999974E-6 : f32
    %53 = vector.broadcast %cst_21 : f32 to vector<1x128xf32>
    %54 = arith.addf %50, %53 : vector<1x128xf32>
    %55 = math.rsqrt %54 : vector<1x128xf32>
    %56 = vector.broadcast %55 : vector<1x128xf32> to vector<4x128xf32>
    %57 = arith.mulf %52, %56 : vector<4x128xf32>
    %58 = vector.broadcast %38 : vector<1x128xf32> to vector<4x128xf32>
    %59 = arith.mulf %57, %58 : vector<4x128xf32>
    %60 = vector.broadcast %39 : vector<1x128xf32> to vector<4x128xf32>
    %61 = arith.addf %59, %60 : vector<4x128xf32>
    %cst_22 = arith.constant 0.000000e+00 : f32
    %62 = vector.broadcast %cst_22 : f32 to vector<4x128xf32>
    %63 = arith.maximumf %61, %62 : vector<4x128xf32>
    %c440 = arith.constant 440 : index
    %c0_23 = arith.constant 0 : index
    %64 = vector.load %arg1[%c440, %c0_23] : memref<584x256xf32, #tpu.memory_space<vmem>>, vector<128x8xf32>
    %cst_24 = arith.constant dense<0.000000e+00> : vector<4x8xf32>
    %65 = tpu.matmul %63, %64, %cst_24 {dimension_numbers = #tpu.dot_dimension_numbers<[1], [0], [0], [1], [0, 0, 1, 1], [], []>} : vector<4x128xf32>, vector<128x8xf32>, vector<4x8xf32> -> vector<4x8xf32>
    %c10 = arith.constant 10 : index
    %c0_25 = arith.constant 0 : index
    %66 = vector.load %arg2[%c10, %c0_25] : memref<16x256xf32, #tpu.memory_space<vmem>>, vector<1x8xf32>
    %67 = vector.broadcast %66 : vector<1x8xf32> to vector<4x8xf32>
    %68 = arith.addf %65, %67 : vector<4x8xf32>
    %c0_26 = arith.constant 0 : index
    %c0_27 = arith.constant 0 : index
    %69 = vector.load %arg1[%c0_26, %c0_27] : memref<584x256xf32, #tpu.memory_space<vmem>>, vector<16x256xf32>
    %cst_28 = arith.constant dense<0.000000e+00> : vector<64x256xf32>
    %70 = tpu.matmul %0, %69, %cst_28 {dimension_numbers = #tpu.dot_dimension_numbers<[1], [0], [0], [1], [0, 0, 1, 1], [], []>} : vector<64x16xf32>, vector<16x256xf32>, vector<64x256xf32> -> vector<64x256xf32>
    %c0_29 = arith.constant 0 : index
    %c0_30 = arith.constant 0 : index
    %71 = vector.load %arg2[%c0_29, %c0_30] : memref<16x256xf32, #tpu.memory_space<vmem>>, vector<1x256xf32>
    %72 = vector.broadcast %71 : vector<1x256xf32> to vector<64x256xf32>
    %73 = arith.addf %70, %72 : vector<64x256xf32>
    %c16 = arith.constant 16 : index
    %c0_31 = arith.constant 0 : index
    %74 = vector.load %arg1[%c16, %c0_31] : memref<584x256xf32, #tpu.memory_space<vmem>>, vector<64x256xf32>
    %75 = vector.extract_strided_slice %73 {offsets = [0, 0], sizes = [8, 256], strides = [1, 1]} : vector<64x256xf32> to vector<8x256xf32>
    %76 = vector.extract_strided_slice %75 {offsets = [0, 0], sizes = [8, 192], strides = [1, 1]} : vector<8x256xf32> to vector<8x192xf32>
    %77 = arith.negf %76 : vector<8x192xf32>
    %78 = math.exp %77 : vector<8x192xf32>
    %cst_32 = arith.constant 1.000000e+00 : f32
    %79 = vector.broadcast %cst_32 : f32 to vector<8x192xf32>
    %80 = arith.addf %79, %78 : vector<8x192xf32>
    %81 = arith.divf %79, %80 : vector<8x192xf32>
    %82 = vector.extract_strided_slice %75 {offsets = [0, 192], sizes = [8, 64], strides = [1, 1]} : vector<8x256xf32> to vector<8x64xf32>
    %83 = math.tanh %82 : vector<8x64xf32>
    %84 = vector.extract_strided_slice %81 {offsets = [0, 0], sizes = [8, 64], strides = [1, 1]} : vector<8x192xf32> to vector<8x64xf32>
    %85 = vector.extract_strided_slice %81 {offsets = [0, 128], sizes = [8, 64], strides = [1, 1]} : vector<8x192xf32> to vector<8x64xf32>
    %86 = arith.mulf %84, %83 : vector<8x64xf32>
    %87 = math.tanh %86 : vector<8x64xf32>
    %88 = arith.mulf %85, %87 : vector<8x64xf32>
    %89 = vector.extract_strided_slice %88 {offsets = [0, 0], sizes = [8, 32], strides = [1, 1]} : vector<8x64xf32> to vector<8x32xf32>
    %c0_33 = arith.constant 0 : index
    %c0_34 = arith.constant 0 : index
    %90 = vector.load %arg4[%c0_33, %c0_34] : memref<64x32xf32, #tpu.memory_space<vmem>>, vector<8x32xf32>
    tpu.vector_store %arg4[%c0_33, %c0_34], %89 {strides = array<i32>} : memref<64x32xf32, #tpu.memory_space<vmem>>, vector<8x32xf32>,
    %91 = vector.extract_strided_slice %88 {offsets = [0, 32], sizes = [8, 32], strides = [1, 1]} : vector<8x64xf32> to vector<8x32xf32>
    %c56 = arith.constant 56 : index
    %c0_35 = arith.constant 0 : index
    %92 = vector.load %arg5[%c56, %c0_35] : memref<64x32xf32, #tpu.memory_space<vmem>>, vector<8x32xf32>
    tpu.vector_store %arg5[%c56, %c0_35], %91 {strides = array<i32>} : memref<64x32xf32, #tpu.memory_space<vmem>>, vector<8x32xf32>,
    %93 = vector.extract_strided_slice %73 {offsets = [8, 0], sizes = [8, 256], strides = [1, 1]} : vector<64x256xf32> to vector<8x256xf32>
    %cst_36 = arith.constant dense<0.000000e+00> : vector<8x256xf32>
    %94 = tpu.matmul %88, %74, %cst_36 {dimension_numbers = #tpu.dot_dimension_numbers<[1], [0], [0], [1], [0, 0, 1, 1], [], []>} : vector<8x64xf32>, vector<64x256xf32>, vector<8x256xf32> -> vector<8x256xf32>
    %95 = arith.addf %93, %94 : vector<8x256xf32>
    %96 = vector.extract_strided_slice %95 {offsets = [0, 0], sizes = [8, 192], strides = [1, 1]} : vector<8x256xf32> to vector<8x192xf32>
    %97 = arith.negf %96 : vector<8x192xf32>
    %98 = math.exp %97 : vector<8x192xf32>
    %cst_37 = arith.constant 1.000000e+00 : f32
    %99 = vector.broadcast %cst_37 : f32 to vector<8x192xf32>
    %100 = arith.addf %99, %98 : vector<8x192xf32>
    %101 = arith.divf %99, %100 : vector<8x192xf32>
    %102 = vector.extract_strided_slice %95 {offsets = [0, 192], sizes = [8, 64], strides = [1, 1]} : vector<8x256xf32> to vector<8x64xf32>
    %103 = math.tanh %102 : vector<8x64xf32>
    %104 = vector.extract_strided_slice %101 {offsets = [0, 0], sizes = [8, 64], strides = [1, 1]} : vector<8x192xf32> to vector<8x64xf32>
    %105 = vector.extract_strided_slice %101 {offsets = [0, 128], sizes = [8, 64], strides = [1, 1]} : vector<8x192xf32> to vector<8x64xf32>
    %106 = vector.extract_strided_slice %101 {offsets = [0, 64], sizes = [8, 64], strides = [1, 1]} : vector<8x192xf32> to vector<8x64xf32>
    %107 = arith.mulf %106, %86 : vector<8x64xf32>
    %108 = arith.mulf %104, %103 : vector<8x64xf32>
    %109 = arith.addf %107, %108 : vector<8x64xf32>
    %110 = math.tanh %109 : vector<8x64xf32>
    %111 = arith.mulf %105, %110 : vector<8x64xf32>
    %112 = vector.extract_strided_slice %111 {offsets = [0, 0], sizes = [8, 32], strides = [1, 1]} : vector<8x64xf32> to vector<8x32xf32>
    %c8_38 = arith.constant 8 : index
    %c0_39 = arith.constant 0 : index
    %113 = vector.load %arg4[%c8_38, %c0_39] : memref<64x32xf32, #tpu.memory_space<vmem>>, vector<8x32xf32>
    tpu.vector_store %arg4[%c8_38, %c0_39], %112 {strides = array<i32>} : memref<64x32xf32, #tpu.memory_space<vmem>>, vector<8x32xf32>,
    %114 = vector.extract_strided_slice %111 {offsets = [0, 32], sizes = [8, 32], strides = [1, 1]} : vector<8x64xf32> to vector<8x32xf32>
    %c48 = arith.constant 48 : index
    %c0_40 = arith.constant 0 : index
    %115 = vector.load %arg5[%c48, %c0_40] : memref<64x32xf32, #tpu.memory_space<vmem>>, vector<8x32xf32>
    tpu.vector_store %arg5[%c48, %c0_40], %114 {strides = array<i32>} : memref<64x32xf32, #tpu.memory_space<vmem>>, vector<8x32xf32>,
    %116 = vector.extract_strided_slice %73 {offsets = [16, 0], sizes = [8, 256], strides = [1, 1]} : vector<64x256xf32> to vector<8x256xf32>
    %cst_41 = arith.constant dense<0.000000e+00> : vector<8x256xf32>
    %117 = tpu.matmul %111, %74, %cst_41 {dimension_numbers = #tpu.dot_dimension_numbers<[1], [0], [0], [1], [0, 0, 1, 1], [], []>} : vector<8x64xf32>, vector<64x256xf32>, vector<8x256xf32> -> vector<8x256xf32>
    %118 = arith.addf %116, %117 : vector<8x256xf32>
    %119 = vector.extract_strided_slice %118 {offsets = [0, 0], sizes = [8, 192], strides = [1, 1]} : vector<8x256xf32> to vector<8x192xf32>
    %120 = arith.negf %119 : vector<8x192xf32>
    %121 = math.exp %120 : vector<8x192xf32>
    %cst_42 = arith.constant 1.000000e+00 : f32
    %122 = vector.broadcast %cst_42 : f32 to vector<8x192xf32>
    %123 = arith.addf %122, %121 : vector<8x192xf32>
    %124 = arith.divf %122, %123 : vector<8x192xf32>
    %125 = vector.extract_strided_slice %118 {offsets = [0, 192], sizes = [8, 64], strides = [1, 1]} : vector<8x256xf32> to vector<8x64xf32>
    %126 = math.tanh %125 : vector<8x64xf32>
    %127 = vector.extract_strided_slice %124 {offsets = [0, 0], sizes = [8, 64], strides = [1, 1]} : vector<8x192xf32> to vector<8x64xf32>
    %128 = vector.extract_strided_slice %124 {offsets = [0, 128], sizes = [8, 64], strides = [1, 1]} : vector<8x192xf32> to vector<8x64xf32>
    %129 = vector.extract_strided_slice %124 {offsets = [0, 64], sizes = [8, 64], strides = [1, 1]} : vector<8x192xf32> to vector<8x64xf32>
    %130 = arith.mulf %129, %109 : vector<8x64xf32>
    %131 = arith.mulf %127, %126 : vector<8x64xf32>
    %132 = arith.addf %130, %131 : vector<8x64xf32>
    %133 = math.tanh %132 : vector<8x64xf32>
    %134 = arith.mulf %128, %133 : vector<8x64xf32>
    %135 = vector.extract_strided_slice %134 {offsets = [0, 0], sizes = [8, 32], strides = [1, 1]} : vector<8x64xf32> to vector<8x32xf32>
    %c16_43 = arith.constant 16 : index
    %c0_44 = arith.constant 0 : index
    %136 = vector.load %arg4[%c16_43, %c0_44] : memref<64x32xf32, #tpu.memory_space<vmem>>, vector<8x32xf32>
    tpu.vector_store %arg4[%c16_43, %c0_44], %135 {strides = array<i32>} : memref<64x32xf32, #tpu.memory_space<vmem>>, vector<8x32xf32>,
    %137 = vector.extract_strided_slice %134 {offsets = [0, 32], sizes = [8, 32], strides = [1, 1]} : vector<8x64xf32> to vector<8x32xf32>
    %c40 = arith.constant 40 : index
    %c0_45 = arith.constant 0 : index
    %138 = vector.load %arg5[%c40, %c0_45] : memref<64x32xf32, #tpu.memory_space<vmem>>, vector<8x32xf32>
    tpu.vector_store %arg5[%c40, %c0_45], %137 {strides = array<i32>} : memref<64x32xf32, #tpu.memory_space<vmem>>, vector<8x32xf32>,
    %139 = vector.extract_strided_slice %73 {offsets = [24, 0], sizes = [8, 256], strides = [1, 1]} : vector<64x256xf32> to vector<8x256xf32>
    %cst_46 = arith.constant dense<0.000000e+00> : vector<8x256xf32>
    %140 = tpu.matmul %134, %74, %cst_46 {dimension_numbers = #tpu.dot_dimension_numbers<[1], [0], [0], [1], [0, 0, 1, 1], [], []>} : vector<8x64xf32>, vector<64x256xf32>, vector<8x256xf32> -> vector<8x256xf32>
    %141 = arith.addf %139, %140 : vector<8x256xf32>
    %142 = vector.extract_strided_slice %141 {offsets = [0, 0], sizes = [8, 192], strides = [1, 1]} : vector<8x256xf32> to vector<8x192xf32>
    %143 = arith.negf %142 : vector<8x192xf32>
    %144 = math.exp %143 : vector<8x192xf32>
    %cst_47 = arith.constant 1.000000e+00 : f32
    %145 = vector.broadcast %cst_47 : f32 to vector<8x192xf32>
    %146 = arith.addf %145, %144 : vector<8x192xf32>
    %147 = arith.divf %145, %146 : vector<8x192xf32>
    %148 = vector.extract_strided_slice %141 {offsets = [0, 192], sizes = [8, 64], strides = [1, 1]} : vector<8x256xf32> to vector<8x64xf32>
    %149 = math.tanh %148 : vector<8x64xf32>
    %150 = vector.extract_strided_slice %147 {offsets = [0, 0], sizes = [8, 64], strides = [1, 1]} : vector<8x192xf32> to vector<8x64xf32>
    %151 = vector.extract_strided_slice %147 {offsets = [0, 128], sizes = [8, 64], strides = [1, 1]} : vector<8x192xf32> to vector<8x64xf32>
    %152 = vector.extract_strided_slice %147 {offsets = [0, 64], sizes = [8, 64], strides = [1, 1]} : vector<8x192xf32> to vector<8x64xf32>
    %153 = arith.mulf %152, %132 : vector<8x64xf32>
    %154 = arith.mulf %150, %149 : vector<8x64xf32>
    %155 = arith.addf %153, %154 : vector<8x64xf32>
    %156 = math.tanh %155 : vector<8x64xf32>
    %157 = arith.mulf %151, %156 : vector<8x64xf32>
    %158 = vector.extract_strided_slice %157 {offsets = [0, 0], sizes = [8, 32], strides = [1, 1]} : vector<8x64xf32> to vector<8x32xf32>
    %c24 = arith.constant 24 : index
    %c0_48 = arith.constant 0 : index
    %159 = vector.load %arg4[%c24, %c0_48] : memref<64x32xf32, #tpu.memory_space<vmem>>, vector<8x32xf32>
    tpu.vector_store %arg4[%c24, %c0_48], %158 {strides = array<i32>} : memref<64x32xf32, #tpu.memory_space<vmem>>, vector<8x32xf32>,
    %160 = vector.extract_strided_slice %157 {offsets = [0, 32], sizes = [8, 32], strides = [1, 1]} : vector<8x64xf32> to vector<8x32xf32>
    %c32 = arith.constant 32 : index
    %c0_49 = arith.constant 0 : index
    %161 = vector.load %arg5[%c32, %c0_49] : memref<64x32xf32, #tpu.memory_space<vmem>>, vector<8x32xf32>
    tpu.vector_store %arg5[%c32, %c0_49], %160 {strides = array<i32>} : memref<64x32xf32, #tpu.memory_space<vmem>>, vector<8x32xf32>,
    %162 = vector.extract_strided_slice %73 {offsets = [32, 0], sizes = [8, 256], strides = [1, 1]} : vector<64x256xf32> to vector<8x256xf32>
    %cst_50 = arith.constant dense<0.000000e+00> : vector<8x256xf32>
    %163 = tpu.matmul %157, %74, %cst_50 {dimension_numbers = #tpu.dot_dimension_numbers<[1], [0], [0], [1], [0, 0, 1, 1], [], []>} : vector<8x64xf32>, vector<64x256xf32>, vector<8x256xf32> -> vector<8x256xf32>
    %164 = arith.addf %162, %163 : vector<8x256xf32>
    %165 = vector.extract_strided_slice %164 {offsets = [0, 0], sizes = [8, 192], strides = [1, 1]} : vector<8x256xf32> to vector<8x192xf32>
    %166 = arith.negf %165 : vector<8x192xf32>
    %167 = math.exp %166 : vector<8x192xf32>
    %cst_51 = arith.constant 1.000000e+00 : f32
    %168 = vector.broadcast %cst_51 : f32 to vector<8x192xf32>
    %169 = arith.addf %168, %167 : vector<8x192xf32>
    %170 = arith.divf %168, %169 : vector<8x192xf32>
    %171 = vector.extract_strided_slice %164 {offsets = [0, 192], sizes = [8, 64], strides = [1, 1]} : vector<8x256xf32> to vector<8x64xf32>
    %172 = math.tanh %171 : vector<8x64xf32>
    %173 = vector.extract_strided_slice %170 {offsets = [0, 0], sizes = [8, 64], strides = [1, 1]} : vector<8x192xf32> to vector<8x64xf32>
    %174 = vector.extract_strided_slice %170 {offsets = [0, 128], sizes = [8, 64], strides = [1, 1]} : vector<8x192xf32> to vector<8x64xf32>
    %175 = vector.extract_strided_slice %170 {offsets = [0, 64], sizes = [8, 64], strides = [1, 1]} : vector<8x192xf32> to vector<8x64xf32>
    %176 = arith.mulf %175, %155 : vector<8x64xf32>
    %177 = arith.mulf %173, %172 : vector<8x64xf32>
    %178 = arith.addf %176, %177 : vector<8x64xf32>
    %179 = math.tanh %178 : vector<8x64xf32>
    %180 = arith.mulf %174, %179 : vector<8x64xf32>
    %181 = vector.extract_strided_slice %180 {offsets = [0, 0], sizes = [8, 32], strides = [1, 1]} : vector<8x64xf32> to vector<8x32xf32>
    %c32_52 = arith.constant 32 : index
    %c0_53 = arith.constant 0 : index
    %182 = vector.load %arg4[%c32_52, %c0_53] : memref<64x32xf32, #tpu.memory_space<vmem>>, vector<8x32xf32>
    tpu.vector_store %arg4[%c32_52, %c0_53], %181 {strides = array<i32>} : memref<64x32xf32, #tpu.memory_space<vmem>>, vector<8x32xf32>,
    %183 = vector.extract_strided_slice %180 {offsets = [0, 32], sizes = [8, 32], strides = [1, 1]} : vector<8x64xf32> to vector<8x32xf32>
    %c24_54 = arith.constant 24 : index
    %c0_55 = arith.constant 0 : index
    %184 = vector.load %arg5[%c24_54, %c0_55] : memref<64x32xf32, #tpu.memory_space<vmem>>, vector<8x32xf32>
    tpu.vector_store %arg5[%c24_54, %c0_55], %183 {strides = array<i32>} : memref<64x32xf32, #tpu.memory_space<vmem>>, vector<8x32xf32>,
    %185 = vector.extract_strided_slice %73 {offsets = [40, 0], sizes = [8, 256], strides = [1, 1]} : vector<64x256xf32> to vector<8x256xf32>
    %cst_56 = arith.constant dense<0.000000e+00> : vector<8x256xf32>
    %186 = tpu.matmul %180, %74, %cst_56 {dimension_numbers = #tpu.dot_dimension_numbers<[1], [0], [0], [1], [0, 0, 1, 1], [], []>} : vector<8x64xf32>, vector<64x256xf32>, vector<8x256xf32> -> vector<8x256xf32>
    %187 = arith.addf %185, %186 : vector<8x256xf32>
    %188 = vector.extract_strided_slice %187 {offsets = [0, 0], sizes = [8, 192], strides = [1, 1]} : vector<8x256xf32> to vector<8x192xf32>
    %189 = arith.negf %188 : vector<8x192xf32>
    %190 = math.exp %189 : vector<8x192xf32>
    %cst_57 = arith.constant 1.000000e+00 : f32
    %191 = vector.broadcast %cst_57 : f32 to vector<8x192xf32>
    %192 = arith.addf %191, %190 : vector<8x192xf32>
    %193 = arith.divf %191, %192 : vector<8x192xf32>
    %194 = vector.extract_strided_slice %187 {offsets = [0, 192], sizes = [8, 64], strides = [1, 1]} : vector<8x256xf32> to vector<8x64xf32>
    %195 = math.tanh %194 : vector<8x64xf32>
    %196 = vector.extract_strided_slice %193 {offsets = [0, 0], sizes = [8, 64], strides = [1, 1]} : vector<8x192xf32> to vector<8x64xf32>
    %197 = vector.extract_strided_slice %193 {offsets = [0, 128], sizes = [8, 64], strides = [1, 1]} : vector<8x192xf32> to vector<8x64xf32>
    %198 = vector.extract_strided_slice %193 {offsets = [0, 64], sizes = [8, 64], strides = [1, 1]} : vector<8x192xf32> to vector<8x64xf32>
    %199 = arith.mulf %198, %178 : vector<8x64xf32>
    %200 = arith.mulf %196, %195 : vector<8x64xf32>
    %201 = arith.addf %199, %200 : vector<8x64xf32>
    %202 = math.tanh %201 : vector<8x64xf32>
    %203 = arith.mulf %197, %202 : vector<8x64xf32>
    %204 = vector.extract_strided_slice %203 {offsets = [0, 0], sizes = [8, 32], strides = [1, 1]} : vector<8x64xf32> to vector<8x32xf32>
    %c40_58 = arith.constant 40 : index
    %c0_59 = arith.constant 0 : index
    %205 = vector.load %arg4[%c40_58, %c0_59] : memref<64x32xf32, #tpu.memory_space<vmem>>, vector<8x32xf32>
    tpu.vector_store %arg4[%c40_58, %c0_59], %204 {strides = array<i32>} : memref<64x32xf32, #tpu.memory_space<vmem>>, vector<8x32xf32>,
    %206 = vector.extract_strided_slice %203 {offsets = [0, 32], sizes = [8, 32], strides = [1, 1]} : vector<8x64xf32> to vector<8x32xf32>
    %c16_60 = arith.constant 16 : index
    %c0_61 = arith.constant 0 : index
    %207 = vector.load %arg5[%c16_60, %c0_61] : memref<64x32xf32, #tpu.memory_space<vmem>>, vector<8x32xf32>
    tpu.vector_store %arg5[%c16_60, %c0_61], %206 {strides = array<i32>} : memref<64x32xf32, #tpu.memory_space<vmem>>, vector<8x32xf32>,
    %208 = vector.extract_strided_slice %73 {offsets = [48, 0], sizes = [8, 256], strides = [1, 1]} : vector<64x256xf32> to vector<8x256xf32>
    %cst_62 = arith.constant dense<0.000000e+00> : vector<8x256xf32>
    %209 = tpu.matmul %203, %74, %cst_62 {dimension_numbers = #tpu.dot_dimension_numbers<[1], [0], [0], [1], [0, 0, 1, 1], [], []>} : vector<8x64xf32>, vector<64x256xf32>, vector<8x256xf32> -> vector<8x256xf32>
    %210 = arith.addf %208, %209 : vector<8x256xf32>
    %211 = vector.extract_strided_slice %210 {offsets = [0, 0], sizes = [8, 192], strides = [1, 1]} : vector<8x256xf32> to vector<8x192xf32>
    %212 = arith.negf %211 : vector<8x192xf32>
    %213 = math.exp %212 : vector<8x192xf32>
    %cst_63 = arith.constant 1.000000e+00 : f32
    %214 = vector.broadcast %cst_63 : f32 to vector<8x192xf32>
    %215 = arith.addf %214, %213 : vector<8x192xf32>
    %216 = arith.divf %214, %215 : vector<8x192xf32>
    %217 = vector.extract_strided_slice %210 {offsets = [0, 192], sizes = [8, 64], strides = [1, 1]} : vector<8x256xf32> to vector<8x64xf32>
    %218 = math.tanh %217 : vector<8x64xf32>
    %219 = vector.extract_strided_slice %216 {offsets = [0, 0], sizes = [8, 64], strides = [1, 1]} : vector<8x192xf32> to vector<8x64xf32>
    %220 = vector.extract_strided_slice %216 {offsets = [0, 128], sizes = [8, 64], strides = [1, 1]} : vector<8x192xf32> to vector<8x64xf32>
    %221 = vector.extract_strided_slice %216 {offsets = [0, 64], sizes = [8, 64], strides = [1, 1]} : vector<8x192xf32> to vector<8x64xf32>
    %222 = arith.mulf %221, %201 : vector<8x64xf32>
    %223 = arith.mulf %219, %218 : vector<8x64xf32>
    %224 = arith.addf %222, %223 : vector<8x64xf32>
    %225 = math.tanh %224 : vector<8x64xf32>
    %226 = arith.mulf %220, %225 : vector<8x64xf32>
    %227 = vector.extract_strided_slice %226 {offsets = [0, 0], sizes = [8, 32], strides = [1, 1]} : vector<8x64xf32> to vector<8x32xf32>
    %c48_64 = arith.constant 48 : index
    %c0_65 = arith.constant 0 : index
    %228 = vector.load %arg4[%c48_64, %c0_65] : memref<64x32xf32, #tpu.memory_space<vmem>>, vector<8x32xf32>
    tpu.vector_store %arg4[%c48_64, %c0_65], %227 {strides = array<i32>} : memref<64x32xf32, #tpu.memory_space<vmem>>, vector<8x32xf32>,
    %229 = vector.extract_strided_slice %226 {offsets = [0, 32], sizes = [8, 32], strides = [1, 1]} : vector<8x64xf32> to vector<8x32xf32>
    %c8_66 = arith.constant 8 : index
    %c0_67 = arith.constant 0 : index
    %230 = vector.load %arg5[%c8_66, %c0_67] : memref<64x32xf32, #tpu.memory_space<vmem>>, vector<8x32xf32>
    tpu.vector_store %arg5[%c8_66, %c0_67], %229 {strides = array<i32>} : memref<64x32xf32, #tpu.memory_space<vmem>>, vector<8x32xf32>,
    %231 = vector.extract_strided_slice %73 {offsets = [56, 0], sizes = [8, 256], strides = [1, 1]} : vector<64x256xf32> to vector<8x256xf32>
    %cst_68 = arith.constant dense<0.000000e+00> : vector<8x256xf32>
    %232 = tpu.matmul %226, %74, %cst_68 {dimension_numbers = #tpu.dot_dimension_numbers<[1], [0], [0], [1], [0, 0, 1, 1], [], []>} : vector<8x64xf32>, vector<64x256xf32>, vector<8x256xf32> -> vector<8x256xf32>
    %233 = arith.addf %231, %232 : vector<8x256xf32>
    %234 = vector.extract_strided_slice %233 {offsets = [0, 0], sizes = [8, 192], strides = [1, 1]} : vector<8x256xf32> to vector<8x192xf32>
    %235 = arith.negf %234 : vector<8x192xf32>
    %236 = math.exp %235 : vector<8x192xf32>
    %cst_69 = arith.constant 1.000000e+00 : f32
    %237 = vector.broadcast %cst_69 : f32 to vector<8x192xf32>
    %238 = arith.addf %237, %236 : vector<8x192xf32>
    %239 = arith.divf %237, %238 : vector<8x192xf32>
    %240 = vector.extract_strided_slice %233 {offsets = [0, 192], sizes = [8, 64], strides = [1, 1]} : vector<8x256xf32> to vector<8x64xf32>
    %241 = math.tanh %240 : vector<8x64xf32>
    %242 = vector.extract_strided_slice %239 {offsets = [0, 0], sizes = [8, 64], strides = [1, 1]} : vector<8x192xf32> to vector<8x64xf32>
    %243 = vector.extract_strided_slice %239 {offsets = [0, 128], sizes = [8, 64], strides = [1, 1]} : vector<8x192xf32> to vector<8x64xf32>
    %244 = vector.extract_strided_slice %239 {offsets = [0, 64], sizes = [8, 64], strides = [1, 1]} : vector<8x192xf32> to vector<8x64xf32>
    %245 = arith.mulf %244, %224 : vector<8x64xf32>
    %246 = arith.mulf %242, %241 : vector<8x64xf32>
    %247 = arith.addf %245, %246 : vector<8x64xf32>
    %248 = math.tanh %247 : vector<8x64xf32>
    %249 = arith.mulf %243, %248 : vector<8x64xf32>
    %250 = vector.extract_strided_slice %249 {offsets = [0, 0], sizes = [8, 32], strides = [1, 1]} : vector<8x64xf32> to vector<8x32xf32>
    %c56_70 = arith.constant 56 : index
    %c0_71 = arith.constant 0 : index
    %251 = vector.load %arg4[%c56_70, %c0_71] : memref<64x32xf32, #tpu.memory_space<vmem>>, vector<8x32xf32>
    tpu.vector_store %arg4[%c56_70, %c0_71], %250 {strides = array<i32>} : memref<64x32xf32, #tpu.memory_space<vmem>>, vector<8x32xf32>,
    %252 = vector.extract_strided_slice %249 {offsets = [0, 32], sizes = [8, 32], strides = [1, 1]} : vector<8x64xf32> to vector<8x32xf32>
    %c0_72 = arith.constant 0 : index
    %c0_73 = arith.constant 0 : index
    %253 = vector.load %arg5[%c0_72, %c0_73] : memref<64x32xf32, #tpu.memory_space<vmem>>, vector<8x32xf32>
    tpu.vector_store %arg5[%c0_72, %c0_73], %252 {strides = array<i32>} : memref<64x32xf32, #tpu.memory_space<vmem>>, vector<8x32xf32>,
    %c0_74 = arith.constant 0 : index
    %c0_75 = arith.constant 0 : index
    %254 = vector.load %arg4[%c0_74, %c0_75] : memref<64x32xf32, #tpu.memory_space<vmem>>, vector<64x32xf32>
    %c80 = arith.constant 80 : index
    %c0_76 = arith.constant 0 : index
    %255 = vector.load %arg1[%c80, %c0_76] : memref<584x256xf32, #tpu.memory_space<vmem>>, vector<32x128xf32>
    %cst_77 = arith.constant dense<0.000000e+00> : vector<64x128xf32>
    %256 = tpu.matmul %254, %255, %cst_77 {dimension_numbers = #tpu.dot_dimension_numbers<[1], [0], [0], [1], [0, 0, 1, 1], [], []>} : vector<64x32xf32>, vector<32x128xf32>, vector<64x128xf32> -> vector<64x128xf32>
    %c0_78 = arith.constant 0 : index
    %c0_79 = arith.constant 0 : index
    %257 = vector.load %arg5[%c0_78, %c0_79] : memref<64x32xf32, #tpu.memory_space<vmem>>, vector<64x32xf32>
    %c112 = arith.constant 112 : index
    %c0_80 = arith.constant 0 : index
    %258 = vector.load %arg1[%c112, %c0_80] : memref<584x256xf32, #tpu.memory_space<vmem>>, vector<32x128xf32>
    %cst_81 = arith.constant dense<0.000000e+00> : vector<64x128xf32>
    %259 = tpu.matmul %257, %258, %cst_81 {dimension_numbers = #tpu.dot_dimension_numbers<[1], [0], [0], [1], [0, 0, 1, 1], [], []>} : vector<64x32xf32>, vector<32x128xf32>, vector<64x128xf32> -> vector<64x128xf32>
    %260 = arith.addf %256, %259 : vector<64x128xf32>
    %c1 = arith.constant 1 : index
    %c0_82 = arith.constant 0 : index
    %261 = vector.load %arg2[%c1, %c0_82] : memref<16x256xf32, #tpu.memory_space<vmem>>, vector<1x128xf32>
    %262 = vector.broadcast %261 : vector<1x128xf32> to vector<64x128xf32>
    %263 = arith.addf %260, %262 : vector<64x128xf32>
    %c144 = arith.constant 144 : index
    %c0_83 = arith.constant 0 : index
    %264 = vector.load %arg1[%c144, %c0_83] : memref<584x256xf32, #tpu.memory_space<vmem>>, vector<32x128xf32>
    %265 = vector.extract_strided_slice %263 {offsets = [0, 0], sizes = [8, 128], strides = [1, 1]} : vector<64x128xf32> to vector<8x128xf32>
    %266 = vector.extract_strided_slice %265 {offsets = [0, 0], sizes = [8, 96], strides = [1, 1]} : vector<8x128xf32> to vector<8x96xf32>
    %267 = arith.negf %266 : vector<8x96xf32>
    %268 = math.exp %267 : vector<8x96xf32>
    %cst_84 = arith.constant 1.000000e+00 : f32
    %269 = vector.broadcast %cst_84 : f32 to vector<8x96xf32>
    %270 = arith.addf %269, %268 : vector<8x96xf32>
    %271 = arith.divf %269, %270 : vector<8x96xf32>
    %272 = vector.extract_strided_slice %265 {offsets = [0, 96], sizes = [8, 32], strides = [1, 1]} : vector<8x128xf32> to vector<8x32xf32>
    %273 = math.tanh %272 : vector<8x32xf32>
    %274 = vector.extract_strided_slice %271 {offsets = [0, 0], sizes = [8, 32], strides = [1, 1]} : vector<8x96xf32> to vector<8x32xf32>
    %275 = vector.extract_strided_slice %271 {offsets = [0, 64], sizes = [8, 32], strides = [1, 1]} : vector<8x96xf32> to vector<8x32xf32>
    %276 = arith.mulf %274, %273 : vector<8x32xf32>
    %277 = math.tanh %276 : vector<8x32xf32>
    %278 = arith.mulf %275, %277 : vector<8x32xf32>
    %279 = vector.extract_strided_slice %263 {offsets = [8, 0], sizes = [8, 128], strides = [1, 1]} : vector<64x128xf32> to vector<8x128xf32>
    %cst_85 = arith.constant dense<0.000000e+00> : vector<8x128xf32>
    %280 = tpu.matmul %278, %264, %cst_85 {dimension_numbers = #tpu.dot_dimension_numbers<[1], [0], [0], [1], [0, 0, 1, 1], [], []>} : vector<8x32xf32>, vector<32x128xf32>, vector<8x128xf32> -> vector<8x128xf32>
    %281 = arith.addf %279, %280 : vector<8x128xf32>
    %282 = vector.extract_strided_slice %281 {offsets = [0, 0], sizes = [8, 96], strides = [1, 1]} : vector<8x128xf32> to vector<8x96xf32>
    %283 = arith.negf %282 : vector<8x96xf32>
    %284 = math.exp %283 : vector<8x96xf32>
    %cst_86 = arith.constant 1.000000e+00 : f32
    %285 = vector.broadcast %cst_86 : f32 to vector<8x96xf32>
    %286 = arith.addf %285, %284 : vector<8x96xf32>
    %287 = arith.divf %285, %286 : vector<8x96xf32>
    %288 = vector.extract_strided_slice %281 {offsets = [0, 96], sizes = [8, 32], strides = [1, 1]} : vector<8x128xf32> to vector<8x32xf32>
    %289 = math.tanh %288 : vector<8x32xf32>
    %290 = vector.extract_strided_slice %287 {offsets = [0, 0], sizes = [8, 32], strides = [1, 1]} : vector<8x96xf32> to vector<8x32xf32>
    %291 = vector.extract_strided_slice %287 {offsets = [0, 64], sizes = [8, 32], strides = [1, 1]} : vector<8x96xf32> to vector<8x32xf32>
    %292 = vector.extract_strided_slice %287 {offsets = [0, 32], sizes = [8, 32], strides = [1, 1]} : vector<8x96xf32> to vector<8x32xf32>
    %293 = arith.mulf %292, %276 : vector<8x32xf32>
    %294 = arith.mulf %290, %289 : vector<8x32xf32>
    %295 = arith.addf %293, %294 : vector<8x32xf32>
    %296 = math.tanh %295 : vector<8x32xf32>
    %297 = arith.mulf %291, %296 : vector<8x32xf32>
    %298 = vector.extract_strided_slice %263 {offsets = [16, 0], sizes = [8, 128], strides = [1, 1]} : vector<64x128xf32> to vector<8x128xf32>
    %cst_87 = arith.constant dense<0.000000e+00> : vector<8x128xf32>
    %299 = tpu.matmul %297, %264, %cst_87 {dimension_numbers = #tpu.dot_dimension_numbers<[1], [0], [0], [1], [0, 0, 1, 1], [], []>} : vector<8x32xf32>, vector<32x128xf32>, vector<8x128xf32> -> vector<8x128xf32>
    %300 = arith.addf %298, %299 : vector<8x128xf32>
    %301 = vector.extract_strided_slice %300 {offsets = [0, 0], sizes = [8, 96], strides = [1, 1]} : vector<8x128xf32> to vector<8x96xf32>
    %302 = arith.negf %301 : vector<8x96xf32>
    %303 = math.exp %302 : vector<8x96xf32>
    %cst_88 = arith.constant 1.000000e+00 : f32
    %304 = vector.broadcast %cst_88 : f32 to vector<8x96xf32>
    %305 = arith.addf %304, %303 : vector<8x96xf32>
    %306 = arith.divf %304, %305 : vector<8x96xf32>
    %307 = vector.extract_strided_slice %300 {offsets = [0, 96], sizes = [8, 32], strides = [1, 1]} : vector<8x128xf32> to vector<8x32xf32>
    %308 = math.tanh %307 : vector<8x32xf32>
    %309 = vector.extract_strided_slice %306 {offsets = [0, 0], sizes = [8, 32], strides = [1, 1]} : vector<8x96xf32> to vector<8x32xf32>
    %310 = vector.extract_strided_slice %306 {offsets = [0, 64], sizes = [8, 32], strides = [1, 1]} : vector<8x96xf32> to vector<8x32xf32>
    %311 = vector.extract_strided_slice %306 {offsets = [0, 32], sizes = [8, 32], strides = [1, 1]} : vector<8x96xf32> to vector<8x32xf32>
    %312 = arith.mulf %311, %295 : vector<8x32xf32>
    %313 = arith.mulf %309, %308 : vector<8x32xf32>
    %314 = arith.addf %312, %313 : vector<8x32xf32>
    %315 = math.tanh %314 : vector<8x32xf32>
    %316 = arith.mulf %310, %315 : vector<8x32xf32>
    %317 = vector.extract_strided_slice %263 {offsets = [24, 0], sizes = [8, 128], strides = [1, 1]} : vector<64x128xf32> to vector<8x128xf32>
    %cst_89 = arith.constant dense<0.000000e+00> : vector<8x128xf32>
    %318 = tpu.matmul %316, %264, %cst_89 {dimension_numbers = #tpu.dot_dimension_numbers<[1], [0], [0], [1], [0, 0, 1, 1], [], []>} : vector<8x32xf32>, vector<32x128xf32>, vector<8x128xf32> -> vector<8x128xf32>
    %319 = arith.addf %317, %318 : vector<8x128xf32>
    %320 = vector.extract_strided_slice %319 {offsets = [0, 0], sizes = [8, 96], strides = [1, 1]} : vector<8x128xf32> to vector<8x96xf32>
    %321 = arith.negf %320 : vector<8x96xf32>
    %322 = math.exp %321 : vector<8x96xf32>
    %cst_90 = arith.constant 1.000000e+00 : f32
    %323 = vector.broadcast %cst_90 : f32 to vector<8x96xf32>
    %324 = arith.addf %323, %322 : vector<8x96xf32>
    %325 = arith.divf %323, %324 : vector<8x96xf32>
    %326 = vector.extract_strided_slice %319 {offsets = [0, 96], sizes = [8, 32], strides = [1, 1]} : vector<8x128xf32> to vector<8x32xf32>
    %327 = math.tanh %326 : vector<8x32xf32>
    %328 = vector.extract_strided_slice %325 {offsets = [0, 0], sizes = [8, 32], strides = [1, 1]} : vector<8x96xf32> to vector<8x32xf32>
    %329 = vector.extract_strided_slice %325 {offsets = [0, 64], sizes = [8, 32], strides = [1, 1]} : vector<8x96xf32> to vector<8x32xf32>
    %330 = vector.extract_strided_slice %325 {offsets = [0, 32], sizes = [8, 32], strides = [1, 1]} : vector<8x96xf32> to vector<8x32xf32>
    %331 = arith.mulf %330, %314 : vector<8x32xf32>
    %332 = arith.mulf %328, %327 : vector<8x32xf32>
    %333 = arith.addf %331, %332 : vector<8x32xf32>
    %334 = math.tanh %333 : vector<8x32xf32>
    %335 = arith.mulf %329, %334 : vector<8x32xf32>
    %336 = vector.extract_strided_slice %263 {offsets = [32, 0], sizes = [8, 128], strides = [1, 1]} : vector<64x128xf32> to vector<8x128xf32>
    %cst_91 = arith.constant dense<0.000000e+00> : vector<8x128xf32>
    %337 = tpu.matmul %335, %264, %cst_91 {dimension_numbers = #tpu.dot_dimension_numbers<[1], [0], [0], [1], [0, 0, 1, 1], [], []>} : vector<8x32xf32>, vector<32x128xf32>, vector<8x128xf32> -> vector<8x128xf32>
    %338 = arith.addf %336, %337 : vector<8x128xf32>
    %339 = vector.extract_strided_slice %338 {offsets = [0, 0], sizes = [8, 96], strides = [1, 1]} : vector<8x128xf32> to vector<8x96xf32>
    %340 = arith.negf %339 : vector<8x96xf32>
    %341 = math.exp %340 : vector<8x96xf32>
    %cst_92 = arith.constant 1.000000e+00 : f32
    %342 = vector.broadcast %cst_92 : f32 to vector<8x96xf32>
    %343 = arith.addf %342, %341 : vector<8x96xf32>
    %344 = arith.divf %342, %343 : vector<8x96xf32>
    %345 = vector.extract_strided_slice %338 {offsets = [0, 96], sizes = [8, 32], strides = [1, 1]} : vector<8x128xf32> to vector<8x32xf32>
    %346 = math.tanh %345 : vector<8x32xf32>
    %347 = vector.extract_strided_slice %344 {offsets = [0, 0], sizes = [8, 32], strides = [1, 1]} : vector<8x96xf32> to vector<8x32xf32>
    %348 = vector.extract_strided_slice %344 {offsets = [0, 64], sizes = [8, 32], strides = [1, 1]} : vector<8x96xf32> to vector<8x32xf32>
    %349 = vector.extract_strided_slice %344 {offsets = [0, 32], sizes = [8, 32], strides = [1, 1]} : vector<8x96xf32> to vector<8x32xf32>
    %350 = arith.mulf %349, %333 : vector<8x32xf32>
    %351 = arith.mulf %347, %346 : vector<8x32xf32>
    %352 = arith.addf %350, %351 : vector<8x32xf32>
    %353 = math.tanh %352 : vector<8x32xf32>
    %354 = arith.mulf %348, %353 : vector<8x32xf32>
    %355 = vector.extract_strided_slice %263 {offsets = [40, 0], sizes = [8, 128], strides = [1, 1]} : vector<64x128xf32> to vector<8x128xf32>
    %cst_93 = arith.constant dense<0.000000e+00> : vector<8x128xf32>
    %356 = tpu.matmul %354, %264, %cst_93 {dimension_numbers = #tpu.dot_dimension_numbers<[1], [0], [0], [1], [0, 0, 1, 1], [], []>} : vector<8x32xf32>, vector<32x128xf32>, vector<8x128xf32> -> vector<8x128xf32>
    %357 = arith.addf %355, %356 : vector<8x128xf32>
    %358 = vector.extract_strided_slice %357 {offsets = [0, 0], sizes = [8, 96], strides = [1, 1]} : vector<8x128xf32> to vector<8x96xf32>
    %359 = arith.negf %358 : vector<8x96xf32>
    %360 = math.exp %359 : vector<8x96xf32>
    %cst_94 = arith.constant 1.000000e+00 : f32
    %361 = vector.broadcast %cst_94 : f32 to vector<8x96xf32>
    %362 = arith.addf %361, %360 : vector<8x96xf32>
    %363 = arith.divf %361, %362 : vector<8x96xf32>
    %364 = vector.extract_strided_slice %357 {offsets = [0, 96], sizes = [8, 32], strides = [1, 1]} : vector<8x128xf32> to vector<8x32xf32>
    %365 = math.tanh %364 : vector<8x32xf32>
    %366 = vector.extract_strided_slice %363 {offsets = [0, 0], sizes = [8, 32], strides = [1, 1]} : vector<8x96xf32> to vector<8x32xf32>
    %367 = vector.extract_strided_slice %363 {offsets = [0, 64], sizes = [8, 32], strides = [1, 1]} : vector<8x96xf32> to vector<8x32xf32>
    %368 = vector.extract_strided_slice %363 {offsets = [0, 32], sizes = [8, 32], strides = [1, 1]} : vector<8x96xf32> to vector<8x32xf32>
    %369 = arith.mulf %368, %352 : vector<8x32xf32>
    %370 = arith.mulf %366, %365 : vector<8x32xf32>
    %371 = arith.addf %369, %370 : vector<8x32xf32>
    %372 = math.tanh %371 : vector<8x32xf32>
    %373 = arith.mulf %367, %372 : vector<8x32xf32>
    %374 = vector.extract_strided_slice %263 {offsets = [48, 0], sizes = [8, 128], strides = [1, 1]} : vector<64x128xf32> to vector<8x128xf32>
    %cst_95 = arith.constant dense<0.000000e+00> : vector<8x128xf32>
    %375 = tpu.matmul %373, %264, %cst_95 {dimension_numbers = #tpu.dot_dimension_numbers<[1], [0], [0], [1], [0, 0, 1, 1], [], []>} : vector<8x32xf32>, vector<32x128xf32>, vector<8x128xf32> -> vector<8x128xf32>
    %376 = arith.addf %374, %375 : vector<8x128xf32>
    %377 = vector.extract_strided_slice %376 {offsets = [0, 0], sizes = [8, 96], strides = [1, 1]} : vector<8x128xf32> to vector<8x96xf32>
    %378 = arith.negf %377 : vector<8x96xf32>
    %379 = math.exp %378 : vector<8x96xf32>
    %cst_96 = arith.constant 1.000000e+00 : f32
    %380 = vector.broadcast %cst_96 : f32 to vector<8x96xf32>
    %381 = arith.addf %380, %379 : vector<8x96xf32>
    %382 = arith.divf %380, %381 : vector<8x96xf32>
    %383 = vector.extract_strided_slice %376 {offsets = [0, 96], sizes = [8, 32], strides = [1, 1]} : vector<8x128xf32> to vector<8x32xf32>
    %384 = math.tanh %383 : vector<8x32xf32>
    %385 = vector.extract_strided_slice %382 {offsets = [0, 0], sizes = [8, 32], strides = [1, 1]} : vector<8x96xf32> to vector<8x32xf32>
    %386 = vector.extract_strided_slice %382 {offsets = [0, 64], sizes = [8, 32], strides = [1, 1]} : vector<8x96xf32> to vector<8x32xf32>
    %387 = vector.extract_strided_slice %382 {offsets = [0, 32], sizes = [8, 32], strides = [1, 1]} : vector<8x96xf32> to vector<8x32xf32>
    %388 = arith.mulf %387, %371 : vector<8x32xf32>
    %389 = arith.mulf %385, %384 : vector<8x32xf32>
    %390 = arith.addf %388, %389 : vector<8x32xf32>
    %391 = math.tanh %390 : vector<8x32xf32>
    %392 = arith.mulf %386, %391 : vector<8x32xf32>
    %393 = vector.extract_strided_slice %263 {offsets = [56, 0], sizes = [8, 128], strides = [1, 1]} : vector<64x128xf32> to vector<8x128xf32>
    %cst_97 = arith.constant dense<0.000000e+00> : vector<8x128xf32>
    %394 = tpu.matmul %392, %264, %cst_97 {dimension_numbers = #tpu.dot_dimension_numbers<[1], [0], [0], [1], [0, 0, 1, 1], [], []>} : vector<8x32xf32>, vector<32x128xf32>, vector<8x128xf32> -> vector<8x128xf32>
    %395 = arith.addf %393, %394 : vector<8x128xf32>
    %396 = vector.extract_strided_slice %395 {offsets = [0, 0], sizes = [8, 96], strides = [1, 1]} : vector<8x128xf32> to vector<8x96xf32>
    %397 = arith.negf %396 : vector<8x96xf32>
    %398 = math.exp %397 : vector<8x96xf32>
    %cst_98 = arith.constant 1.000000e+00 : f32
    %399 = vector.broadcast %cst_98 : f32 to vector<8x96xf32>
    %400 = arith.addf %399, %398 : vector<8x96xf32>
    %401 = arith.divf %399, %400 : vector<8x96xf32>
    %402 = vector.extract_strided_slice %395 {offsets = [0, 96], sizes = [8, 32], strides = [1, 1]} : vector<8x128xf32> to vector<8x32xf32>
    %403 = math.tanh %402 : vector<8x32xf32>
    %404 = vector.extract_strided_slice %401 {offsets = [0, 0], sizes = [8, 32], strides = [1, 1]} : vector<8x96xf32> to vector<8x32xf32>
    %405 = vector.extract_strided_slice %401 {offsets = [0, 64], sizes = [8, 32], strides = [1, 1]} : vector<8x96xf32> to vector<8x32xf32>
    %406 = vector.extract_strided_slice %401 {offsets = [0, 32], sizes = [8, 32], strides = [1, 1]} : vector<8x96xf32> to vector<8x32xf32>
    %407 = arith.mulf %406, %390 : vector<8x32xf32>
    %408 = arith.mulf %404, %403 : vector<8x32xf32>
    %409 = arith.addf %407, %408 : vector<8x32xf32>
    %410 = math.tanh %409 : vector<8x32xf32>
    %411 = arith.mulf %405, %410 : vector<8x32xf32>
    %c56_99 = arith.constant 56 : index
    %c0_100 = arith.constant 0 : index
    %412 = vector.load %arg4[%c56_99, %c0_100] : memref<64x32xf32, #tpu.memory_space<vmem>>, vector<8x32xf32>
    %c176 = arith.constant 176 : index
    %c0_101 = arith.constant 0 : index
    %413 = vector.load %arg1[%c176, %c0_101] : memref<584x256xf32, #tpu.memory_space<vmem>>, vector<32x128xf32>
    %cst_102 = arith.constant dense<0.000000e+00> : vector<8x128xf32>
    %414 = tpu.matmul %412, %413, %cst_102 {dimension_numbers = #tpu.dot_dimension_numbers<[1], [0], [0], [1], [0, 0, 1, 1], [], []>} : vector<8x32xf32>, vector<32x128xf32>, vector<8x128xf32> -> vector<8x128xf32>
    %c56_103 = arith.constant 56 : index
    %c0_104 = arith.constant 0 : index
    %415 = vector.load %arg5[%c56_103, %c0_104] : memref<64x32xf32, #tpu.memory_space<vmem>>, vector<8x32xf32>
    %c208 = arith.constant 208 : index
    %c0_105 = arith.constant 0 : index
    %416 = vector.load %arg1[%c208, %c0_105] : memref<584x256xf32, #tpu.memory_space<vmem>>, vector<32x128xf32>
    %cst_106 = arith.constant dense<0.000000e+00> : vector<8x128xf32>
    %417 = tpu.matmul %415, %416, %cst_106 {dimension_numbers = #tpu.dot_dimension_numbers<[1], [0], [0], [1], [0, 0, 1, 1], [], []>} : vector<8x32xf32>, vector<32x128xf32>, vector<8x128xf32> -> vector<8x128xf32>
    %418 = arith.addf %414, %417 : vector<8x128xf32>
    %c2 = arith.constant 2 : index
    %c0_107 = arith.constant 0 : index
    %419 = vector.load %arg2[%c2, %c0_107] : memref<16x256xf32, #tpu.memory_space<vmem>>, vector<1x128xf32>
    %420 = vector.broadcast %419 : vector<1x128xf32> to vector<8x128xf32>
    %421 = arith.addf %418, %420 : vector<8x128xf32>
    %422 = vector.extract_strided_slice %421 {offsets = [0, 0], sizes = [8, 96], strides = [1, 1]} : vector<8x128xf32> to vector<8x96xf32>
    %423 = arith.negf %422 : vector<8x96xf32>
    %424 = math.exp %423 : vector<8x96xf32>
    %cst_108 = arith.constant 1.000000e+00 : f32
    %425 = vector.broadcast %cst_108 : f32 to vector<8x96xf32>
    %426 = arith.addf %425, %424 : vector<8x96xf32>
    %427 = arith.divf %425, %426 : vector<8x96xf32>
    %428 = vector.extract_strided_slice %427 {offsets = [0, 0], sizes = [8, 32], strides = [1, 1]} : vector<8x96xf32> to vector<8x32xf32>
    %429 = vector.extract_strided_slice %421 {offsets = [0, 96], sizes = [8, 32], strides = [1, 1]} : vector<8x128xf32> to vector<8x32xf32>
    %430 = math.tanh %429 : vector<8x32xf32>
    %431 = arith.mulf %428, %430 : vector<8x32xf32>
    %432 = vector.extract_strided_slice %427 {offsets = [0, 64], sizes = [8, 32], strides = [1, 1]} : vector<8x96xf32> to vector<8x32xf32>
    %433 = math.tanh %431 : vector<8x32xf32>
    %434 = arith.mulf %432, %433 : vector<8x32xf32>
    %c240 = arith.constant 240 : index
    %c0_109 = arith.constant 0 : index
    %435 = vector.load %arg1[%c240, %c0_109] : memref<584x256xf32, #tpu.memory_space<vmem>>, vector<32x8xf32>
    %cst_110 = arith.constant dense<0.000000e+00> : vector<8x8xf32>
    %436 = tpu.matmul %411, %435, %cst_110 {dimension_numbers = #tpu.dot_dimension_numbers<[1], [0], [0], [1], [0, 0, 1, 1], [], []>} : vector<8x32xf32>, vector<32x8xf32>, vector<8x8xf32> -> vector<8x8xf32>
    %c272 = arith.constant 272 : index
    %c0_111 = arith.constant 0 : index
    %437 = vector.load %arg1[%c272, %c0_111] : memref<584x256xf32, #tpu.memory_space<vmem>>, vector<32x8xf32>
    %cst_112 = arith.constant dense<0.000000e+00> : vector<8x8xf32>
    %438 = tpu.matmul %434, %437, %cst_112 {dimension_numbers = #tpu.dot_dimension_numbers<[1], [0], [0], [1], [0, 0, 1, 1], [], []>} : vector<8x32xf32>, vector<32x8xf32>, vector<8x8xf32> -> vector<8x8xf32>
    %439 = arith.addf %436, %438 : vector<8x8xf32>
    %c3 = arith.constant 3 : index
    %c0_113 = arith.constant 0 : index
    %440 = vector.load %arg2[%c3, %c0_113] : memref<16x256xf32, #tpu.memory_space<vmem>>, vector<1x8xf32>
    %441 = vector.broadcast %440 : vector<1x8xf32> to vector<8x8xf32>
    %442 = arith.addf %439, %441 : vector<8x8xf32>
    %443 = vector.extract_strided_slice %442 {offsets = [0, 0], sizes = [4, 8], strides = [1, 1]} : vector<8x8xf32> to vector<4x8xf32>
    %444 = arith.addf %68, %443 : vector<4x8xf32>
    %c568 = arith.constant 568 : index
    %c0_114 = arith.constant 0 : index
    %445 = vector.load %arg1[%c568, %c0_114] : memref<584x256xf32, #tpu.memory_space<vmem>>, vector<8x8xf32>
    %cst_115 = arith.constant dense<0.000000e+00> : vector<4x8xf32>
    %446 = tpu.matmul %444, %445, %cst_115 {dimension_numbers = #tpu.dot_dimension_numbers<[1], [0], [0], [1], [0, 0, 1, 1], [], []>} : vector<4x8xf32>, vector<8x8xf32>, vector<4x8xf32> -> vector<4x8xf32>
    %c11 = arith.constant 11 : index
    %c0_116 = arith.constant 0 : index
    %447 = vector.load %arg2[%c11, %c0_116] : memref<16x256xf32, #tpu.memory_space<vmem>>, vector<1x8xf32>
    %448 = vector.broadcast %447 : vector<1x8xf32> to vector<4x8xf32>
    %449 = arith.addf %446, %448 : vector<4x8xf32>
    %c12 = arith.constant 12 : index
    %c0_117 = arith.constant 0 : index
    %450 = vector.load %arg2[%c12, %c0_117] : memref<16x256xf32, #tpu.memory_space<vmem>>, vector<1x8xf32>
    %c13 = arith.constant 13 : index
    %c0_118 = arith.constant 0 : index
    %451 = vector.load %arg2[%c13, %c0_118] : memref<16x256xf32, #tpu.memory_space<vmem>>, vector<1x8xf32>
    %cst_119 = arith.constant dense<0.000000e+00> : vector<8xf32>
    %452 = vector.multi_reduction <add>, %449, %cst_119 [0] : vector<4x8xf32> to vector<8xf32>
    %453 = vector.shape_cast %452 : vector<8xf32> to vector<1x8xf32>
    %cst_120 = arith.constant 4.000000e+00 : f32
    %454 = vector.broadcast %cst_120 : f32 to vector<1x8xf32>
    %455 = arith.divf %453, %454 : vector<1x8xf32>
    %456 = vector.broadcast %455 : vector<1x8xf32> to vector<4x8xf32>
    %457 = arith.subf %449, %456 : vector<4x8xf32>
    %458 = arith.mulf %457, %457 : vector<4x8xf32>
    %cst_121 = arith.constant dense<0.000000e+00> : vector<8xf32>
    %459 = vector.multi_reduction <add>, %458, %cst_121 [0] : vector<4x8xf32> to vector<8xf32>
    %460 = vector.shape_cast %459 : vector<8xf32> to vector<1x8xf32>
    %cst_122 = arith.constant 4.000000e+00 : f32
    %461 = vector.broadcast %cst_122 : f32 to vector<1x8xf32>
    %462 = arith.divf %460, %461 : vector<1x8xf32>
    %463 = vector.broadcast %455 : vector<1x8xf32> to vector<4x8xf32>
    %464 = arith.subf %449, %463 : vector<4x8xf32>
    %cst_123 = arith.constant 9.99999974E-6 : f32
    %465 = vector.broadcast %cst_123 : f32 to vector<1x8xf32>
    %466 = arith.addf %462, %465 : vector<1x8xf32>
    %467 = math.rsqrt %466 : vector<1x8xf32>
    %468 = vector.broadcast %467 : vector<1x8xf32> to vector<4x8xf32>
    %469 = arith.mulf %464, %468 : vector<4x8xf32>
    %470 = vector.broadcast %450 : vector<1x8xf32> to vector<4x8xf32>
    %471 = arith.mulf %469, %470 : vector<4x8xf32>
    %472 = vector.broadcast %451 : vector<1x8xf32> to vector<4x8xf32>
    %473 = arith.addf %471, %472 : vector<4x8xf32>
    %cst_124 = arith.constant 0.000000e+00 : f32
    %474 = vector.broadcast %cst_124 : f32 to vector<4x8xf32>
    %475 = arith.maximumf %473, %474 : vector<4x8xf32>
    %c576 = arith.constant 576 : index
    %c0_125 = arith.constant 0 : index
    %476 = vector.load %arg1[%c576, %c0_125] : memref<584x256xf32, #tpu.memory_space<vmem>>, vector<8x8xf32>
    %cst_126 = arith.constant dense<0.000000e+00> : vector<4x8xf32>
    %477 = tpu.matmul %475, %476, %cst_126 {dimension_numbers = #tpu.dot_dimension_numbers<[1], [0], [0], [1], [0, 0, 1, 1], [], []>} : vector<4x8xf32>, vector<8x8xf32>, vector<4x8xf32> -> vector<4x8xf32>
    %c14 = arith.constant 14 : index
    %c0_127 = arith.constant 0 : index
    %478 = vector.load %arg2[%c14, %c0_127] : memref<16x256xf32, #tpu.memory_space<vmem>>, vector<1x8xf32>
    %479 = vector.broadcast %478 : vector<1x8xf32> to vector<4x8xf32>
    %480 = arith.addf %477, %479 : vector<4x8xf32>
    %c0_128 = arith.constant 0 : index
    %c0_129 = arith.constant 0 : index
    %481 = vector.load %arg3[%c0_128, %c0_129] : memref<4x8xf32, #tpu.memory_space<vmem>>, vector<4x8xf32>
    tpu.vector_store %arg3[%c0_128, %c0_129], %480 {strides = array<i32>} : memref<4x8xf32, #tpu.memory_space<vmem>>, vector<4x8xf32>,
    return
  }
}

</mosaic_0001>

<bundles_post_ra>
// kernel: qnn_forward.1
= control target key start
LH: loop header
LB: loop body
LE: loop exit
PB: predicated region body
PF: predicated region fallthrough
CT: control target
= control target key end

     0   :  { %8 = vsyncpa [#allocation5], 0  ;;  %s4341_s0 = inlined_call_operand.vmem [shape: f32[72,16], index: 0, kind: input, shape index: {}]   ;;  %s4342_s1 = inlined_call_operand.hbm [shape: f32[584,256], index: 1, kind: input, shape index: {}]   ;;  %s4343_s2 = inlined_call_operand.vmem [shape: f32[16,256], index: 2, kind: input, shape index: {}]   ;;  %s4344_s3 = inlined_call_operand.hbm [shape: f32[4,8], index: 3, kind: output, shape index: {}]  }
   0x1   :  { %9 = vsyncpa [#allocation6], 0  ;;  %s3815_s12 = smov [#allocation4]   ;;  %s3767_s16 = scalar_lea.hbm %s4342_s1, 18688 }
   0x2   :  { %s17_s13 = sshll.u32 %s3815_s12, 4  ;;  %p3768_p0 = scmp.ne.s32.totalorder %s4342_s1, %s3767_s16  ;;  %s18_s13 = int_to_ptr.vmem [resolvable:$true] %s17_s13 }
   0x3   :  { %p3771_p1 = scmp.lt.u32.totalorder %s3767_s16, %s4342_s1 }
   0x5   :  { %p3773_p2 = pnand %p3771_p1, %p3768_p0 }
   0x7   :  { %3776 = shalt.err (!%p3773_p2)
}
   0x8   :  { %s3777_s21 = scalar_lea.vmem %s18_s13, 18688  ;;  %p3782_p4 = scmp.lt.s32.totalorder %s18_s13, %s18_s13 }
   0x9   :  { %p3778_p3 = scmp.ne.s32.totalorder %s18_s13, %s3777_s21  ;;  %p3783_p5 = scmp.lt.s32.totalorder %s3777_s21, %s3777_s21 }
   0xb   :  { %p3784_p6 = por %p3783_p5, %p3782_p4 }
   0xd   :  { %p3785_p7 = pnand %p3784_p6, %p3778_p3 }
   0xf   :  { %3788 = shalt.err (!%p3785_p7)
}
  0x10   :  { %s3816_s22 = smov 256   ;;  %s3817_s23 = smov 16  }
  0x11   :  { %23 = dma.hbm_to_vmem [thread:$0]  %s4342_s1, 18688, %s18_s13, [#allocation5], %s3816_s22, %s3816_s22, %s3817_s23  }
  0x12   :  { %3811 = dma.done.wait [#allocation5], 18688  }
  0x13   :  { %3812 = vsyncadd [#allocation5], 4294948608  ;;  %v3818_v0 = vmov 0.0   ;;  %vm3819_vm0 = vmmov 0   ;;  %vm40_vm1 = vcmask 64512   ;;  %v38_v1 = vld [vmem:[#allocation4 + $0x260] sm:$0xff] }
  0x14   :  { %3049 = vmatprep.subr.mxu0 %v3818_v0  ;;  %3051 = vmatprep.mubr.msk.f32.mxu0 %vm3819_vm0, %v3818_v0  ;;  %v37_v2 = vld [vmem:[%s4341_s0 + $0x40] sm:$0xf]  ;;  %v142_v3 = vld [vmem:[#allocation4 + $0x270] sm:$0xff]  ;;  %v143_v4 = vld [vmem:[#allocation4 + $0x280] sm:$0xff]  ;;  %v3820_v6 = vmov 0.0|0.0   ;;  %vm116_vm2 = vcmask 1043456  }
  0x15   :  { %3086 = vmatprep.mubr.msk.f32.mxu1 %vm3819_vm0, %v3818_v0  ;;  %3050 = vmatpush3.msra.mxu0 %v38_v1  ;;  %v3296_v5 = vpack.c.bf16 %v143_v4, %v142_v3  ;;  %v144_v7 = vld [vmem:[#allocation4 + $0x290] sm:$0xff]  ;;  %v145_v8 = vld [vmem:[#allocation4 + $0x2a0] sm:$0xff]  ;;  %v343_v27 = vld [vmem:[#allocation4 + $0x8] sm:$0xff]  ;;  %vm358_vm3 = vcmask 130048   ;;  %s3821_s26 = smov 64   ;;  %vm532_vm4 = vcmask 261120  }
  0x16   :  { %3052 = vmatmul.mubr.msk.f32.vlgmr.msra.gmra.mrb[0].mxu0 %vm40_vm1, %v37_v2  ;;  %3295 = vmatprep.subr.bf16.mxu1 %v3820_v6  ;;  %v3299_v9 = vpack.c.bf16 %v145_v8, %v144_v7  ;;  %v146_v10 = vld [vmem:[#allocation4 + $0x2b0] sm:$0xff]  ;;  %v147_v11 = vld [vmem:[#allocation4 + $0x2c0] sm:$0xff]  ;;  %v345_v29 = vld [vmem:[#allocation4 + $0x18] sm:$0xff]  ;;  %v348_v2 = vlaneseq  ;;  %vm539_vm5 = vcmask 523264   ;;  %s3822_s29 = smov 96   ;;  %s3823_s5 = smov 32  }
  0x17   :  { %3121 = vmatprep.mubr.msk.f32.mxu0 %vm3819_vm0, %v3818_v0  ;;  %3319 = vmatprep.subr.bf16.mxu0 %v3820_v6  ;;  %v3302_v12 = vpack.c.bf16 %v147_v11, %v146_v10  ;;  %v148_v13 = vld [vmem:[#allocation4 + $0x2d0] sm:$0xff]  ;;  %v149_v14 = vld [vmem:[#allocation4 + $0x2e0] sm:$0xff]  ;;  %v3343_v30 = vpack.c.bf16 %v345_v29, %v343_v27  ;;  %v39_v31 = vld [vmem:[%s4343_s2 + $0x4] ss:$0 sm:$0xff]  ;;  %vm2744_vm6 = vcmask 60416   ;;  %s3824_s20 = smov [#allocation7]  }
  0x18   :  { %3297 = vmatpush3.bf16.msra.mxu1 %v3296_v5  ;;  %v3305_v15 = vpack.c.bf16 %v149_v14, %v148_v13  ;;  %v150_v16 = vld [vmem:[#allocation4 + $0x2f0] sm:$0xff]  ;;  %v151_v17 = vld [vmem:[#allocation4 + $0x300] sm:$0xff]  ;;  %v114_v55 = vld [vmem:[%s4343_s2 + $0x5] ss:$0 sm:$0xff]  ;;  %v3894_v3 = vshrl.u32 %v348_v2, 7  ;;  %s2851_s21 = sshll.u32 %s3824_s20, 4  ;;  %s2852_s21 = int_to_ptr.vmem [resolvable:$true] %s2851_s21 }
  0x19   :  { %3298 = vmatprep.subr.bf16.mxu1 %v3820_v6  ;;  %v3308_v18 = vpack.c.bf16 %v151_v17, %v150_v16  ;;  %v152_v19 = vld [vmem:[#allocation4 + $0x310] sm:$0xff]  ;;  %v153_v20 = vld [vmem:[#allocation4 + $0x320] sm:$0xff]  ;;  %v115_v57 = vld [vmem:[%s4343_s2 + $0x6] ss:$0 sm:$0xff]  ;;  %s3789_s22 = scalar_lea.vmem %s2852_s21, 64  ;;  %p3794_p9 = scmp.lt.s32.totalorder %s2852_s21, %s2852_s21 }
  0x1a   :  { %v3311_v21 = vpack.c.bf16 %v153_v20, %v152_v19  ;;  %v154_v22 = vld [vmem:[#allocation4 + $0x330] sm:$0xff]  ;;  %v155_v23 = vld [vmem:[#allocation4 + $0x340] sm:$0xff]  ;;  %v29_v1 = vld [vmem:[%s4341_s0] sm:$0xff]  ;;  %v350_v4 = vsub.s32 0, %v3894_v3  ;;  %p3790_p8 = scmp.ne.s32.totalorder %s2852_s21, %s3789_s22  ;;  %p3795_p10 = scmp.lt.s32.totalorder %s3789_s22, %s3789_s22 }
  0x1b   :  { %v3314_v24 = vpack.c.bf16 %v155_v23, %v154_v22  ;;  %v156_v25 = vld [vmem:[#allocation4 + $0x350] sm:$0xff]  ;;  %v157_v26 = vld [vmem:[#allocation4 + $0x360] sm:$0xff] }
  0x1c   :  { %3300 = vmatpush3.bf16.msra.mxu1 %v3299_v9  ;;  %v3317_v28 = vpack.c.bf16 %v157_v26, %v156_v25  ;;  %v342_v59 = vld [vmem:[#allocation4] sm:$0xff]  ;;  %v344_v60 = vld [vmem:[#allocation4 + $0x10] sm:$0xff]  ;;  %p3796_p11 = por %p3795_p10, %p3794_p9 }
  0x1d   :  { %3301 = vmatprep.subr.bf16.mxu1 %v3820_v6  ;;  %v3345_v62 = vpack.c.bf16 %v344_v60, %v342_v59  ;;  %v3900_v5 = vld [vmem:[%s4343_s2] ss:$8 sm:$0x3]  ;;  %v255_v8 = vld [vmem:[#allocation4 + $0x370] sm:$0xff] }
  0x1e   :  { %v3903_v7 = vrot.slane %v3900_v5, %v350_v4  ;;  %v256_v9 = vld [vmem:[#allocation4 + $0x380] sm:$0xff]  ;;  %v257_v11 = vld [vmem:[#allocation4 + $0x390] sm:$0xff]  ;;  %p3797_p12 = pnand %p3796_p11, %p3790_p8 }
  0x1f   :  { %v3320_v10 = vpack.c.bf16 %v256_v9, %v255_v8  ;;  %v259_v14 = vld [vmem:[#allocation4 + $0x3b0] sm:$0xff]  ;;  %v268_v27 = vld [vmem:[#allocation4 + $0x440] sm:$0xff]  ;;  %v35_v9 = vld [vmem:[%s4341_s0 + $0x30] sm:$0xff] }
  0x20   :  { %3303 = vmatpush3.bf16.msra.mxu1 %v3302_v12  ;;  %v258_v12 = vld [vmem:[#allocation4 + $0x3a0] sm:$0xff]  ;;  %v261_v17 = vld [vmem:[#allocation4 + $0x3d0] sm:$0xff] }
  0x21   :  { %3304 = vmatprep.subr.bf16.mxu1 %v3820_v6  ;;  %3321 = vmatpush3.bf16.msra.mxu0 %v3320_v10  ;;  %v3323_v13 = vpack.c.bf16 %v258_v12, %v257_v11  ;;  %v263_v20 = vld [vmem:[#allocation4 + $0x3f0] sm:$0xff]  ;;  %v509_v11 = vld [vmem:[#allocation4 + $0x88] sm:$0xff]  ;;  %v511_v12 = vld [vmem:[#allocation4 + $0x98] sm:$0xff] }
  0x22   :  { %3322 = vmatprep.subr.bf16.mxu0 %v3820_v6  ;;  %v265_v23 = vld [vmem:[#allocation4 + $0x410] sm:$0xff] }
  0x23   :  { %v267_v26 = vld [vmem:[#allocation4 + $0x430] sm:$0xff] }
  0x24   :  { %3306 = vmatpush3.bf16.msra.mxu1 %v3305_v15  ;;  %v260_v15 = vld [vmem:[#allocation4 + $0x3c0] sm:$0xff]  ;;  %v269_v29 = vld [vmem:[#allocation4 + $0x450] sm:$0xff] }
  0x25   :  { %3307 = vmatprep.subr.bf16.mxu1 %v3820_v6  ;;  %3324 = vmatpush3.bf16.msra.mxu0 %v3323_v13  ;;  %v3326_v16 = vpack.c.bf16 %v260_v15, %v259_v14  ;;  %v3969_v13 = vpack.c.bf16 %v511_v12, %v509_v11  ;;  %v508_v14 = vld [vmem:[#allocation4 + $0x80] sm:$0xff]  ;;  %v510_v15 = vld [vmem:[#allocation4 + $0x90] sm:$0xff] }
  0x26   :  { %3325 = vmatprep.subr.bf16.mxu0 %v3820_v6 }
  0x28   :  { %3309 = vmatpush3.bf16.msra.mxu1 %v3308_v18  ;;  %v262_v18 = vld [vmem:[#allocation4 + $0x3e0] sm:$0xff] }
  0x29   :  { %3310 = vmatprep.subr.bf16.mxu1 %v3820_v6  ;;  %3327 = vmatpush3.bf16.msra.mxu0 %v3326_v16  ;;  %v3329_v19 = vpack.c.bf16 %v262_v18, %v261_v17  ;;  %v3971_v17 = vpack.c.bf16 %v510_v15, %v508_v14  ;;  %v36_v18 = vld [vmem:[%s4341_s0 + $0x38] sm:$0xff] }
  0x2a   :  { %3328 = vmatprep.subr.bf16.mxu0 %v3820_v6 }
  0x2c   :  { %3312 = vmatpush3.bf16.msra.mxu1 %v3311_v21  ;;  %v264_v21 = vld [vmem:[#allocation4 + $0x400] sm:$0xff] }
  0x2d   :  { %3313 = vmatprep.subr.bf16.mxu1 %v3820_v6  ;;  %3330 = vmatpush3.bf16.msra.mxu0 %v3329_v19  ;;  %v3332_v22 = vpack.c.bf16 %v264_v21, %v263_v20 }
  0x2e   :  { %3331 = vmatprep.subr.bf16.mxu0 %v3820_v6 }
  0x30   :  { %3315 = vmatpush3.bf16.msra.mxu1 %v3314_v24  ;;  %v266_v24 = vld [vmem:[#allocation4 + $0x420] sm:$0xff] }
  0x31   :  { %3316 = vmatprep.subr.bf16.mxu1 %v3820_v6  ;;  %3333 = vmatpush3.bf16.msra.mxu0 %v3332_v22  ;;  %v3335_v25 = vpack.c.bf16 %v266_v24, %v265_v23 }
  0x32   :  { %3334 = vmatprep.subr.bf16.mxu0 %v3820_v6 }
  0x34   :  { %3318 = vmatpush3.bf16.msra.mxu1 %v3317_v28  ;;  %v3338_v28 = vpack.c.bf16 %v268_v27, %v267_v26 }
  0x35   :  { %3344 = vmatprep.subr.bf16.mxu1 %v3343_v30  ;;  %3336 = vmatpush3.bf16.msra.mxu0 %v3335_v25  ;;  %v270_v30 = vld [vmem:[#allocation4 + $0x460] sm:$0xff] }
  0x36   :  { %3337 = vmatprep.subr.bf16.mxu0 %v3820_v6 }
  0x39   :  { %3339 = vmatpush3.bf16.msra.mxu0 %v3338_v28 }
  0x3a   :  { %3340 = vmatprep.subr.bf16.mxu0 %v3820_v6 }
  0xe9   :  { %v110_v32 = vpop.f32.mrb[0].mxu0 }
  0xea   :  { %v111_v33 = vadd.f32 %v110_v32, %v39_v31  ;;  %v3053_v34 = vpop.f32.mrb[1].mxu0  ;;  %v3341_v31 = vpack.c.bf16 %v270_v30, %v269_v29  ;;  %v497_v32 = vld [vmem:[#allocation4 + $0x28] sm:$0xff] }
  0xeb   :  { %v496_v34 = vld [vmem:[#allocation4 + $0x20] sm:$0xff] }
  0xec   :  { %v117_v35 = vsel %vm116_vm2, %v111_v33, 0.0  ;;  %3342 = vmatpush3.bf16.msra.mxu0 %v3341_v31 }
  0xed   :  { %v118_v36 = vrot.slane %v117_v35, 4 }
  0xef   :  { %v119_v37 = vadd.f32 %v118_v36, %v117_v35  ;;  %v498_v36 = vld [vmem:[#allocation4 + $0x30] sm:$0xff] }
  0xf1   :  { %v120_v38 = vrot.slane %v119_v37, 2 }
  0xf3   :  { %v121_v39 = vadd.f32 %v120_v38, %v119_v37  ;;  %v30_v37 = vld [vmem:[%s4341_s0 + $0x8] sm:$0xff]  ;;  %v501_v38 = vld [vmem:[#allocation4 + $0x48] sm:$0xff] }
  0xf5   :  { %v122_v40 = vrot.slane %v121_v39, 1 }
  0xf7   :  { %v123_v41 = vadd.f32 %v122_v40, %v121_v39  ;;  %v3917_v39 = vpack.c.bf16 %v498_v36, %v496_v34  ;;  %v503_v40 = vld [vmem:[#allocation4 + $0x58] sm:$0xff]  ;;  %v230_v34 = vld [vmem:[%s4343_s2 + $0x11] ss:$0 sm:$0xff] }
  0xf9   :  { %v125_v42 = vmul.f32 0.25, %v123_v41  ;;  %v500_v41 = vld [vmem:[#allocation4 + $0x40] sm:$0xff] }
  0xfb   :  { %v126_v43 = vsub.f32 %v111_v33, %v125_v42  ;;  %v499_v33 = vld [vmem:[#allocation4 + $0x38] sm:$0xff]  ;;  %v3922_v42 = vpack.c.bf16 %v503_v40, %v501_v38 }
  0xfc   :  { %v3912_v35 = vpack.c.bf16 %v499_v33, %v497_v32  ;;  %v229_v32 = vld [vmem:[%s4343_s2 + $0x10] ss:$0 sm:$0xff] }
  0xfd   :  { %v127_v44 = vmul.f32 %v126_v43, %v126_v43 }
  0xff   :  { %v128_v45 = vsel %vm116_vm2, %v127_v44, 0.0  ;;  %v502_v44 = vld [vmem:[#allocation4 + $0x50] sm:$0xff] }
 0x100   :  { %v129_v46 = vrot.slane %v128_v45, 4 }
 0x102   :  { %v130_v47 = vadd.f32 %v129_v46, %v128_v45  ;;  %v505_v45 = vld [vmem:[#allocation4 + $0x68] sm:$0xff]  ;;  %v3928_v46 = vpack.c.bf16 %v502_v44, %v500_v41 }
 0x104   :  { %v131_v48 = vrot.slane %v130_v47, 2 }
 0x106   :  { %v132_v49 = vadd.f32 %v131_v48, %v130_v47  ;;  %v507_v47 = vld [vmem:[#allocation4 + $0x78] sm:$0xff] }
 0x107   :  { %v3931_v48 = vpack.c.bf16 %v507_v47, %v505_v45 }
 0x108   :  { %v133_v50 = vrot.slane %v132_v49, 1 }
 0x10a   :  { %v134_v51 = vadd.f32 %v133_v50, %v132_v49  ;;  %v504_v49 = vld [vmem:[#allocation4 + $0x60] sm:$0xff]  ;;  %v506_v50 = vld [vmem:[#allocation4 + $0x70] sm:$0xff] }
 0x10c   :  { %v135_v52 = vmul.f32 0.25, %v134_v51  ;;  %v32_v51 = vld [vmem:[%s4341_s0 + $0x18] sm:$0xff] }
 0x10e   :  { %v136_v53 = vadd.f32 1e-05, %v135_v52  ;;  %v3939_v52 = vpack.c.bf16 %v506_v50, %v504_v49 }
 0x110   :  { %3593 = vrsqrt.f32 %v136_v53  ;;  %v33_v53 = vld [vmem:[%s4341_s0 + $0x20] sm:$0xff] }
 0x11a   :  { %v3594_v54 = vpop.eup %3593 }
 0x11b   :  { %v138_v56 = vmul.f32 %v3594_v54, %v126_v43  ;;  %v31_v43 = vld [vmem:[%s4341_s0 + $0x10] sm:$0xff]  ;;  %v158_v54 = vld [vmem:[%s4343_s2 + $0x7] ss:$0 sm:$0xff] }
 0x11d   :  { %v139_v58 = vmul.f32 %v138_v56, %v114_v55  ;;  %v354_v55 = vsub.s32 1, %v3894_v3  ;;  %v34_v3 = vld [vmem:[%s4341_s0 + $0x28] sm:$0xff] }
 0x11f   :  { %v140_v61 = vadd.f32 %v139_v58, %v115_v57  ;;  %v3955_v59 = vrot.slane %v3900_v5, %v354_v55 }
 0x121   :  { %v141_v63 = vmax.f32 %v140_v61, 0.0 }
 0x123   :  { %3087 = vmatmul.mubr.f32.vlgmr.msra.gmra.mrb[0].mxu1 %v141_v63 }
 0x124   :  { %3346 = vmatpush1.bf16.msra.mxu1 %v3345_v62  ;;  %447 = vmatprep.mubr.f32.mxu1 %v3818_v0 }
 0x125   :  { %3348 = vmatprep.subr.bf16.mxu1 %v3912_v35 }
 0x127   :  { %2861 = vmatmul.mubr.msk.f32.vlgmr.msra.gmra.mrb[2].mxu1 %vm358_vm3, %v29_v1 }
 0x128   :  { %453 = vmatprep.mubr.f32.mxu1 %v3818_v0  ;;  %3350 = vmatpush1.bf16.msra.mxu1 %v3917_v39 }
 0x129   :  { %3352 = vmatprep.subr.bf16.mxu1 %v3922_v42 }
 0x12b   :  { %2862 = vmatmul.mubr.msk.f32.gmra.mrb[4].mxu1 %vm358_vm3, %v30_v37 }
 0x12c   :  { %459 = vmatprep.mubr.f32.mxu1 %v3818_v0  ;;  %3354 = vmatpush1.bf16.msra.mxu1 %v3928_v46 }
 0x12d   :  { %3356 = vmatprep.subr.bf16.mxu1 %v3931_v48 }
 0x12f   :  { %2863 = vmatmul.mubr.msk.f32.gmra.mrb[6].mxu1 %vm358_vm3, %v31_v43 }
 0x130   :  { %465 = vmatprep.mubr.f32.mxu1 %v3818_v0  ;;  %3358 = vmatpush1.bf16.msra.mxu1 %v3939_v52 }
 0x131   :  { %3360 = vmatprep.subr.bf16.mxu1 %v3969_v13 }
 0x133   :  { %2864 = vmatmul.mubr.msk.f32.gmra.mrb[8].mxu1 %vm358_vm3, %v32_v51 }
 0x134   :  { %471 = vmatprep.mubr.f32.mxu1 %v3818_v0  ;;  %3362 = vmatpush1.bf16.msra.mxu1 %v3971_v17 }
 0x135   :  { %3364 = vmatprep.subr.bf16.mxu1 %v3912_v35 }
 0x137   :  { %2865 = vmatmul.mubr.msk.f32.gmra.mrb[10].mxu1 %vm358_vm3, %v33_v53 }
 0x138   :  { %477 = vmatprep.mubr.f32.mxu1 %v3818_v0 }
 0x13b   :  { %2866 = vmatmul.mubr.msk.f32.gmra.mrb[12].mxu1 %vm358_vm3, %v34_v3 }
 0x13c   :  { %483 = vmatprep.mubr.f32.mxu1 %v3818_v0 }
 0x13f   :  { %2867 = vmatmul.mubr.msk.f32.gmra.mrb[14].mxu1 %vm358_vm3, %v35_v9 }
 0x140   :  { %489 = vmatprep.mubr.f32.mxu1 %v3818_v0 }
 0x143   :  { %2868 = vmatmul.mubr.msk.f32.gmra.mrb[16].mxu1 %vm358_vm3, %v36_v18 }
 0x144   :  { %606 = vmatprep.mubr.f32.mxu1 %v3818_v0 }
 0x1f6   :  { %v225_v56 = vpop.f32.mrb[0].mxu1 }
 0x1f7   :  { %v226_v57 = vadd.f32 %v225_v56, %v158_v54  ;;  %v3088_v58 = vpop.f32.mrb[1].mxu1 }
 0x1f9   :  { %v231_v60 = vsel %vm116_vm2, %v226_v57, 0.0 }
 0x1fa   :  { %v232_v61 = vrot.slane %v231_v60, 4  ;;  %v449_v62 = vpop.f32.mrb[2].mxu1 }
 0x1fb   :  { %v451_v63 = vpop.f32.mrb[3].mxu1  ;;  %v450_v40 = vadd.f32 %v449_v62, %v3903_v7 }
 0x1fc   :  { %v233_v1 = vadd.f32 %v232_v61, %v231_v60  ;;  %v452_v2 = vadd.f32 %v451_v63, %v3955_v59 }
 0x1fd   :  { %v2869_v41 = vmul.f32 -1.442695, %v450_v40 }
 0x1fe   :  { %v234_v4 = vrot.slane %v233_v1, 2  ;;  %3595 = vtanh.f32 %v452_v2  ;;  %v2870_v43 = vmul.f32 -1.442695, %v452_v2 }
 0x200   :  { %v235_v8 = vadd.f32 %v234_v4, %v233_v1 }
 0x202   :  { %v236_v5 = vrot.slane %v235_v8, 1 }
 0x204   :  { %v237_v10 = vadd.f32 %v236_v5, %v235_v8 }
 0x206   :  { %v238_v16 = vmul.f32 0.25, %v237_v10 }
 0x208   :  { %v3596_v19 = vpop.eup %3595  ;;  %v239_v20 = vsub.f32 %v226_v57, %v238_v16 }
 0x209   :  { %526 = vrot.lane.b32.xlu0 %v3596_v19, %s3821_s26 }
 0x20a   :  { %v240_v21 = vmul.f32 %v239_v20, %v239_v20 }
 0x20c   :  { %v241_v22 = vsel %vm116_vm2, %v240_v21, 0.0 }
 0x20d   :  { %v242_v23 = vrot.slane %v241_v22, 4 }
 0x20f   :  { %v243_v24 = vadd.f32 %v242_v23, %v241_v22 }
 0x211   :  { %v244_v25 = vrot.slane %v243_v24, 2 }
 0x213   :  { %v245_v26 = vadd.f32 %v244_v25, %v243_v24 }
 0x215   :  { %v246_v27 = vrot.slane %v245_v26, 1 }
 0x217   :  { %v247_v28 = vadd.f32 %v246_v27, %v245_v26 }
 0x219   :  { %v248_v29 = vmul.f32 0.25, %v247_v28 }
 0x21b   :  { %v249_v30 = vadd.f32 1e-05, %v248_v29 }
 0x21d   :  { %3597 = vrsqrt.f32 %v249_v30 }
 0x21e   :  { %3599 = vpow2.f32 %v2869_v41 }
 0x21f   :  { %3601 = vpow2.f32 %v2870_v43 }
 0x227   :  { %v3598_v31 = vpop.eup %3597 }
 0x228   :  { %v251_v33 = vmul.f32 %v3598_v31, %v239_v20  ;;  %v3600_v44 = vpop.eup %3599 }
 0x229   :  { %v518_v45 = vadd.f32 1.0, %v3600_v44  ;;  %v3602_v47 = vpop.eup %3601 }
 0x22a   :  { %v252_v36 = vmul.f32 %v251_v33, %v229_v32  ;;  %v519_v49 = vadd.f32 1.0, %v3602_v47 }
 0x22b   :  { %3603 = vrcp.f32 %v518_v45 }
 0x22c   :  { %v253_v37 = vadd.f32 %v252_v36, %v230_v34  ;;  %3605 = vrcp.f32 %v519_v49 }
 0x22e   :  { %v254_v38 = vmax.f32 %v253_v37, 0.0 }
 0x230   :  { %3122 = vmatmul.mubr.f32.vlgmr.msra.gmra.mrb[2].mxu0 %v254_v38 }
 0x235   :  { %v3604_v50 = vpop.eup %3603 }
 0x236   :  { %v3606_v54 = vpop.eup %3605 }
 0x27b   :  { %v527_v51 = vpop.permute.xlu0 %526 }
 0x27c   :  { %v529_v53 = vmul.f32 %v3604_v50, %v527_v51 }
 0x27e   :  { %3607 = vtanh.f32 %v529_v53  ;;  %629 = vrot.lane.b32.xlu1 %v529_v53, %s3821_s26 }
 0x288   :  { %v3608_v55 = vpop.eup %3607 }
 0x289   :  { %v3991_v56 = vmul.f32 %v3608_v55, %v3606_v54 }
 0x28b   :  { %533 = vst.msk [vmem:[#allocation2] sm:$0xff] %vm532_vm4, %v3991_v56  ;;  %2871 = vmatmul.mubr.msk.f32.vlgmr.msra.gmra.mrb[4].mxu1 %vm539_vm5, %v3991_v56 }
 0x28c   :  { %3366 = vmatpush1.bf16.msra.mxu1 %v3917_v39  ;;  %721 = vmatprep.mubr.f32.mxu1 %v3818_v0 }
 0x28d   :  { %3368 = vmatprep.subr.bf16.mxu1 %v3922_v42 }
 0x290   :  { %3370 = vmatpush1.bf16.msra.mxu1 %v3928_v46 }
 0x291   :  { %3372 = vmatprep.subr.bf16.mxu1 %v3931_v48 }
 0x294   :  { %3374 = vmatpush1.bf16.msra.mxu1 %v3939_v52 }
 0x295   :  { %3376 = vmatprep.subr.bf16.mxu1 %v3969_v13 }
 0x298   :  { %3378 = vmatpush1.bf16.msra.mxu1 %v3971_v17 }
 0x299   :  { %3380 = vmatprep.subr.bf16.mxu1 %v3912_v35 }
 0x2f0   :  { %v630_v5 = vpop.permute.xlu1 %629 }
 0x35e   :  { %v608_v57 = vpop.f32.mrb[4].mxu1 }
 0x35f   :  { %v610_v58 = vpop.f32.mrb[5].mxu1  ;;  %v3543_v62 = vadd.f32 %v608_v57, %v3903_v7 }
 0x360   :  { %v3544_v60 = vadd.f32 %v610_v58, %v3955_v59 }
 0x361   :  { %v2872_v63 = vmul.f32 -1.442695, %v3543_v62 }
 0x362   :  { %3609 = vtanh.f32 %v3544_v60  ;;  %v2873_v14 = vmul.f32 -1.442695, %v3544_v60 }
 0x363   :  { %3611 = vpow2.f32 %v2872_v63 }
 0x36c   :  { %v3610_v61 = vpop.eup %3609 }
 0x36d   :  { %634 = vrot.lane.b32.xlu0 %v3610_v61, %s3821_s26  ;;  %v3612_v1 = vpop.eup %3611 }
 0x36e   :  { %v621_v2 = vadd.f32 1.0, %v3612_v1 }
 0x370   :  { %3613 = vrcp.f32 %v621_v2 }
 0x37a   :  { %v3614_v4 = vpop.eup %3613 }
 0x37b   :  { %v632_v9 = vmul.f32 %v3614_v4, %v630_v5 }
 0x3df   :  { %v635_v3 = vpop.permute.xlu0 %634 }
 0x3e0   :  { %v637_v8 = vmul.f32 %v3614_v4, %v635_v3 }
 0x3e2   :  { %639 = vrot.lane.b32.xlu1 %v637_v8, %s3821_s26 }
 0x454   :  { %v640_v10 = vpop.permute.xlu1 %639 }
 0x455   :  { %v642_v11 = vadd.f32 %v640_v10, %v632_v9 }
 0x457   :  { %3615 = vtanh.f32 %v642_v11 }
 0x458   :  { %3617 = vpow2.f32 %v2873_v14 }
 0x461   :  { %v3616_v12 = vpop.eup %3615 }
 0x462   :  { %645 = vrot.lane.b32.xlu0 %v3616_v12, %s3821_s26  ;;  %v3618_v15 = vpop.eup %3617 }
 0x463   :  { %v622_v16 = vadd.f32 1.0, %v3618_v15 }
 0x465   :  { %3619 = vrcp.f32 %v622_v16 }
 0x46f   :  { %v3620_v18 = vpop.eup %3619 }
 0x4d4   :  { %v646_v19 = vpop.permute.xlu0 %645 }
 0x4d5   :  { %v4011_v20 = vmul.f32 %v3620_v18, %v646_v19 }
 0x4d7   :  { %649 = vst.msk [vmem:[#allocation2 + $0x8] sm:$0xff] %vm532_vm4, %v4011_v20  ;;  %2874 = vmatmul.mubr.msk.f32.vlgmr.msra.gmra.mrb[6].mxu1 %vm539_vm5, %v4011_v20 }
 0x4d8   :  { %3382 = vmatpush1.bf16.msra.mxu1 %v3917_v39  ;;  %832 = vmatprep.mubr.f32.mxu1 %v3818_v0 }
 0x4d9   :  { %3384 = vmatprep.subr.bf16.mxu1 %v3922_v42 }
 0x4dc   :  { %3386 = vmatpush1.bf16.msra.mxu1 %v3928_v46 }
 0x4dd   :  { %3388 = vmatprep.subr.bf16.mxu1 %v3931_v48 }
 0x4e0   :  { %3390 = vmatpush1.bf16.msra.mxu1 %v3939_v52 }
 0x4e1   :  { %3392 = vmatprep.subr.bf16.mxu1 %v3969_v13 }
 0x4e4   :  { %3394 = vmatpush1.bf16.msra.mxu1 %v3971_v17 }
 0x4e5   :  { %3396 = vmatprep.subr.bf16.mxu1 %v3912_v35 }
 0x5aa   :  { %v723_v21 = vpop.f32.mrb[6].mxu1 }
 0x5ab   :  { %v725_v22 = vpop.f32.mrb[7].mxu1  ;;  %v3545_v25 = vadd.f32 %v723_v21, %v3903_v7 }
 0x5ac   :  { %v3546_v23 = vadd.f32 %v725_v22, %v3955_v59 }
 0x5ad   :  { %v2875_v26 = vmul.f32 -1.442695, %v3545_v25 }
 0x5ae   :  { %3621 = vtanh.f32 %v3546_v23  ;;  %v2876_v37 = vmul.f32 -1.442695, %v3546_v23 }
 0x5af   :  { %3623 = vpow2.f32 %v2875_v26 }
 0x5b8   :  { %v3622_v24 = vpop.eup %3621 }
 0x5b9   :  { %745 = vrot.lane.b32.xlu1 %v3622_v24, %s3821_s26  ;;  %v3624_v27 = vpop.eup %3623 }
 0x5ba   :  { %v736_v28 = vadd.f32 1.0, %v3624_v27 }
 0x5bc   :  { %3625 = vrcp.f32 %v736_v28 }
 0x5c6   :  { %v3626_v29 = vpop.eup %3625 }
 0x5c7   :  { %v743_v32 = vmul.f32 %v3626_v29, %v642_v11 }
 0x62b   :  { %v746_v30 = vpop.permute.xlu1 %745 }
 0x62c   :  { %v748_v31 = vmul.f32 %v3626_v29, %v746_v30 }
 0x62e   :  { %750 = vrot.lane.b32.xlu0 %v748_v31, %s3821_s26 }
 0x6a0   :  { %v751_v33 = vpop.permute.xlu0 %750 }
 0x6a1   :  { %v753_v34 = vadd.f32 %v751_v33, %v743_v32 }
 0x6a3   :  { %3627 = vtanh.f32 %v753_v34 }
 0x6a4   :  { %3629 = vpow2.f32 %v2876_v37 }
 0x6ad   :  { %v3628_v36 = vpop.eup %3627 }
 0x6ae   :  { %756 = vrot.lane.b32.xlu1 %v3628_v36, %s3821_s26  ;;  %v3630_v38 = vpop.eup %3629 }
 0x6af   :  { %v737_v40 = vadd.f32 1.0, %v3630_v38 }
 0x6b1   :  { %3631 = vrcp.f32 %v737_v40 }
 0x6bb   :  { %v3632_v41 = vpop.eup %3631 }
 0x720   :  { %v757_v43 = vpop.permute.xlu1 %756 }
 0x721   :  { %v4031_v44 = vmul.f32 %v3632_v41, %v757_v43 }
 0x723   :  { %760 = vst.msk [vmem:[#allocation2 + $0x10] sm:$0xff] %vm532_vm4, %v4031_v44  ;;  %2877 = vmatmul.mubr.msk.f32.vlgmr.msra.gmra.mrb[8].mxu1 %vm539_vm5, %v4031_v44 }
 0x724   :  { %3398 = vmatpush1.bf16.msra.mxu1 %v3917_v39  ;;  %943 = vmatprep.mubr.f32.mxu1 %v3818_v0 }
 0x725   :  { %3400 = vmatprep.subr.bf16.mxu1 %v3922_v42 }
 0x728   :  { %3402 = vmatpush1.bf16.msra.mxu1 %v3928_v46 }
 0x729   :  { %3404 = vmatprep.subr.bf16.mxu1 %v3931_v48 }
 0x72c   :  { %3406 = vmatpush1.bf16.msra.mxu1 %v3939_v52 }
 0x72d   :  { %3408 = vmatprep.subr.bf16.mxu1 %v3969_v13 }
 0x730   :  { %3410 = vmatpush1.bf16.msra.mxu1 %v3971_v17 }
 0x731   :  { %3412 = vmatprep.subr.bf16.mxu1 %v3912_v35 }
 0x7f6   :  { %v834_v45 = vpop.f32.mrb[8].mxu1 }
 0x7f7   :  { %v836_v47 = vpop.f32.mrb[9].mxu1  ;;  %v3547_v51 = vadd.f32 %v834_v45, %v3903_v7 }
 0x7f8   :  { %v3548_v49 = vadd.f32 %v836_v47, %v3955_v59 }
 0x7f9   :  { %v2878_v53 = vmul.f32 -1.442695, %v3547_v51 }
 0x7fa   :  { %3633 = vtanh.f32 %v3548_v49  ;;  %v2879_v2 = vmul.f32 -1.442695, %v3548_v49 }
 0x7fb   :  { %3635 = vpow2.f32 %v2878_v53 }
 0x804   :  { %v3634_v50 = vpop.eup %3633 }
 0x805   :  { %856 = vrot.lane.b32.xlu0 %v3634_v50, %s3821_s26  ;;  %v3636_v54 = vpop.eup %3635 }
 0x806   :  { %v847_v55 = vadd.f32 1.0, %v3636_v54 }
 0x808   :  { %3637 = vrcp.f32 %v847_v55 }
 0x812   :  { %v3638_v57 = vpop.eup %3637 }
 0x813   :  { %v854_v61 = vmul.f32 %v3638_v57, %v753_v34 }
 0x877   :  { %v857_v58 = vpop.permute.xlu0 %856 }
 0x878   :  { %v859_v60 = vmul.f32 %v3638_v57, %v857_v58 }
 0x87a   :  { %861 = vrot.lane.b32.xlu1 %v859_v60, %s3821_s26 }
 0x8ec   :  { %v862_v62 = vpop.permute.xlu1 %861 }
 0x8ed   :  { %v864_v63 = vadd.f32 %v862_v62, %v854_v61 }
 0x8ef   :  { %3639 = vtanh.f32 %v864_v63 }
 0x8f0   :  { %3641 = vpow2.f32 %v2879_v2 }
 0x8f9   :  { %v3640_v1 = vpop.eup %3639 }
 0x8fa   :  { %867 = vrot.lane.b32.xlu0 %v3640_v1, %s3821_s26  ;;  %v3642_v4 = vpop.eup %3641 }
 0x8fb   :  { %v848_v3 = vadd.f32 1.0, %v3642_v4 }
 0x8fd   :  { %3643 = vrcp.f32 %v848_v3 }
 0x907   :  { %v3644_v8 = vpop.eup %3643 }
 0x96c   :  { %v868_v5 = vpop.permute.xlu0 %867 }
 0x96d   :  { %v4051_v9 = vmul.f32 %v3644_v8, %v868_v5 }
 0x96f   :  { %871 = vst.msk [vmem:[#allocation2 + $0x18] sm:$0xff] %vm532_vm4, %v4051_v9  ;;  %2880 = vmatmul.mubr.msk.f32.vlgmr.msra.gmra.mrb[10].mxu1 %vm539_vm5, %v4051_v9 }
 0x970   :  { %3414 = vmatpush1.bf16.msra.mxu1 %v3917_v39  ;;  %1054 = vmatprep.mubr.f32.mxu1 %v3818_v0 }
 0x971   :  { %3416 = vmatprep.subr.bf16.mxu1 %v3922_v42 }
 0x974   :  { %3418 = vmatpush1.bf16.msra.mxu1 %v3928_v46 }
 0x975   :  { %3420 = vmatprep.subr.bf16.mxu1 %v3931_v48 }
 0x978   :  { %3422 = vmatpush1.bf16.msra.mxu1 %v3939_v52 }
 0x979   :  { %3424 = vmatprep.subr.bf16.mxu1 %v3969_v13 }
 0x97c   :  { %3426 = vmatpush1.bf16.msra.mxu1 %v3971_v17 }
 0x97d   :  { %3428 = vmatprep.subr.bf16.mxu1 %v3912_v35 }
 0xa42   :  { %v945_v10 = vpop.f32.mrb[10].mxu1 }
 0xa43   :  { %v947_v11 = vpop.f32.mrb[11].mxu1  ;;  %v3549_v15 = vadd.f32 %v945_v10, %v3903_v7 }
 0xa44   :  { %v3550_v12 = vadd.f32 %v947_v11, %v3955_v59 }
 0xa45   :  { %v2881_v16 = vmul.f32 -1.442695, %v3549_v15 }
 0xa46   :  { %3645 = vtanh.f32 %v3550_v12  ;;  %v2882_v28 = vmul.f32 -1.442695, %v3550_v12 }
 0xa47   :  { %3647 = vpow2.f32 %v2881_v16 }
 0xa50   :  { %v3646_v14 = vpop.eup %3645 }
 0xa51   :  { %967 = vrot.lane.b32.xlu1 %v3646_v14, %s3821_s26  ;;  %v3648_v18 = vpop.eup %3647 }
 0xa52   :  { %v958_v19 = vadd.f32 1.0, %v3648_v18 }
 0xa54   :  { %3649 = vrcp.f32 %v958_v19 }
 0xa5e   :  { %v3650_v21 = vpop.eup %3649 }
 0xa5f   :  { %v965_v24 = vmul.f32 %v3650_v21, %v864_v63 }
 0xac3   :  { %v968_v22 = vpop.permute.xlu1 %967 }
 0xac4   :  { %v970_v23 = vmul.f32 %v3650_v21, %v968_v22 }
 0xac6   :  { %972 = vrot.lane.b32.xlu0 %v970_v23, %s3821_s26 }
 0xb38   :  { %v973_v25 = vpop.permute.xlu0 %972 }
 0xb39   :  { %v975_v26 = vadd.f32 %v973_v25, %v965_v24 }
 0xb3b   :  { %3651 = vtanh.f32 %v975_v26 }
 0xb3c   :  { %3653 = vpow2.f32 %v2882_v28 }
 0xb45   :  { %v3652_v27 = vpop.eup %3651 }
 0xb46   :  { %978 = vrot.lane.b32.xlu1 %v3652_v27, %s3821_s26  ;;  %v3654_v29 = vpop.eup %3653 }
 0xb47   :  { %v959_v30 = vadd.f32 1.0, %v3654_v29 }
 0xb49   :  { %3655 = vrcp.f32 %v959_v30 }
 0xb53   :  { %v3656_v31 = vpop.eup %3655 }
 0xbb8   :  { %v979_v32 = vpop.permute.xlu1 %978 }
 0xbb9   :  { %v4071_v33 = vmul.f32 %v3656_v31, %v979_v32 }
 0xbbb   :  { %982 = vst.msk [vmem:[#allocation2 + $0x20] sm:$0xff] %vm532_vm4, %v4071_v33  ;;  %2883 = vmatmul.mubr.msk.f32.vlgmr.msra.gmra.mrb[12].mxu1 %vm539_vm5, %v4071_v33 }
 0xbbc   :  { %3430 = vmatpush1.bf16.msra.mxu1 %v3917_v39  ;;  %1165 = vmatprep.mubr.f32.mxu1 %v3818_v0 }
 0xbbd   :  { %3432 = vmatprep.subr.bf16.mxu1 %v3922_v42 }
 0xbc0   :  { %3434 = vmatpush1.bf16.msra.mxu1 %v3928_v46 }
 0xbc1   :  { %3436 = vmatprep.subr.bf16.mxu1 %v3931_v48 }
 0xbc4   :  { %3438 = vmatpush1.bf16.msra.mxu1 %v3939_v52 }
 0xbc5   :  { %3440 = vmatprep.subr.bf16.mxu1 %v3969_v13 }
 0xbc8   :  { %3442 = vmatpush1.bf16.msra.mxu1 %v3971_v17 }
 0xbc9   :  { %3444 = vmatprep.subr.bf16.mxu1 %v3912_v35 }
 0xc8e   :  { %v1056_v34 = vpop.f32.mrb[12].mxu1 }
 0xc8f   :  { %v1058_v36 = vpop.f32.mrb[13].mxu1  ;;  %v3551_v40 = vadd.f32 %v1056_v34, %v3903_v7 }
 0xc90   :  { %v3552_v37 = vadd.f32 %v1058_v36, %v3955_v59 }
 0xc91   :  { %v2884_v41 = vmul.f32 -1.442695, %v3551_v40  ;;  %v1342_v40 = vld [vmem:[#allocation4 + $0xf0] sm:$0xff] }
 0xc92   :  { %3657 = vtanh.f32 %v3552_v37  ;;  %v2885_v55 = vmul.f32 -1.442695, %v3552_v37 }
 0xc93   :  { %3659 = vpow2.f32 %v2884_v41 }
 0xc9c   :  { %v3658_v38 = vpop.eup %3657 }
 0xc9d   :  { %1078 = vrot.lane.b32.xlu0 %v3658_v38, %s3821_s26  ;;  %v3660_v43 = vpop.eup %3659  ;;  %v1341_v38 = vld [vmem:[#allocation4 + $0xe0] sm:$0xff] }
 0xc9e   :  { %v1069_v45 = vadd.f32 1.0, %v3660_v43  ;;  %v3459_v41 = vpack.c.bf16 %v1342_v40, %v1341_v38  ;;  %v1343_v43 = vld [vmem:[#allocation4 + $0x100] sm:$0xff] }
 0xc9f   :  { %v1612_v40 = vld [vmem:[#allocation4 + $0x120] sm:$0xff] }
 0xca0   :  { %3661 = vrcp.f32 %v1069_v45  ;;  %3460 = vmatprep.subr.bf16.mxu0 %v3459_v41  ;;  %v1344_v45 = vld [vmem:[#allocation4 + $0x110] sm:$0xff] }
 0xca1   :  { %3462 = vmatpush3.bf16.msra.mxu0 %v3459_v41  ;;  %v1613_v41 = vld [vmem:[#allocation4 + $0x130] sm:$0xff] }
 0xcaa   :  { %v3662_v47 = vpop.eup %3661 }
 0xcab   :  { %v1076_v35 = vmul.f32 %v3662_v47, %v975_v26 }
 0xd0f   :  { %v1079_v49 = vpop.permute.xlu0 %1078 }
 0xd10   :  { %v1081_v50 = vmul.f32 %v3662_v47, %v1079_v49  ;;  %v3463_v47 = vpack.c.bf16 %v1344_v45, %v1343_v43  ;;  %v1614_v43 = vld [vmem:[#allocation4 + $0x140] sm:$0xff]  ;;  %v4181_v45 = vpack.c.bf16 %v1613_v41, %v1612_v40 }
 0xd12   :  { %1083 = vrot.lane.b32.xlu1 %v1081_v50, %s3821_s26  ;;  %3464 = vmatprep.subr.bf16.mxu0 %v3463_v47 }
 0xd13   :  { %3466 = vmatpush3.bf16.msra.mxu0 %v3463_v47  ;;  %v1615_v47 = vld [vmem:[#allocation4 + $0x150] sm:$0xff] }
 0xd84   :  { %v1084_v51 = vpop.permute.xlu1 %1083 }
 0xd85   :  { %v1086_v53 = vadd.f32 %v1084_v51, %v1076_v35 }
 0xd87   :  { %3663 = vtanh.f32 %v1086_v53 }
 0xd88   :  { %3665 = vpow2.f32 %v2885_v55 }
 0xd91   :  { %v3664_v54 = vpop.eup %3663 }
 0xd92   :  { %1089 = vrot.lane.b32.xlu0 %v3664_v54, %s3821_s26  ;;  %v3666_v57 = vpop.eup %3665 }
 0xd93   :  { %v1070_v58 = vadd.f32 1.0, %v3666_v57 }
 0xd95   :  { %3667 = vrcp.f32 %v1070_v58 }
 0xd9f   :  { %v3668_v60 = vpop.eup %3667 }
 0xe04   :  { %v1090_v61 = vpop.permute.xlu0 %1089 }
 0xe05   :  { %v4091_v62 = vmul.f32 %v3668_v60, %v1090_v61  ;;  %v1331_v60 = vld [vmem:[#allocation4 + $0xc0] sm:$0xff]  ;;  %v1332_v61 = vld [vmem:[#allocation4 + $0xd0] sm:$0xff] }
 0xe07   :  { %1093 = vst.msk [vmem:[#allocation2 + $0x28] sm:$0xff] %vm532_vm4, %v4091_v62  ;;  %2886 = vmatmul.mubr.msk.f32.vlgmr.msra.gmra.mrb[14].mxu1 %vm539_vm5, %v4091_v62 }
 0xe08   :  { %3446 = vmatpush1.bf16.msra.mxu1 %v3917_v39  ;;  %1276 = vmatprep.mubr.f32.mxu1 %v3818_v0 }
 0xe09   :  { %3448 = vmatprep.subr.bf16.mxu1 %v3922_v42 }
 0xe0c   :  { %3450 = vmatpush1.bf16.msra.mxu1 %v3928_v46 }
 0xe0d   :  { %3452 = vmatprep.subr.bf16.mxu1 %v3931_v48 }
 0xe10   :  { %3454 = vmatpush1.bf16.msra.mxu1 %v3939_v52 }
 0xe11   :  { %3456 = vmatprep.subr.bf16.mxu1 %v3969_v13 }
 0xe14   :  { %3458 = vmatpush1.bf16.msra.mxu1 %v3971_v17 }
 0xeda   :  { %v1167_v63 = vpop.f32.mrb[14].mxu1 }
 0xedb   :  { %v1169_v1 = vpop.f32.mrb[15].mxu1  ;;  %v3553_v42 = vadd.f32 %v1167_v63, %v3903_v7 }
 0xedc   :  { %v3554_v2 = vadd.f32 %v1169_v1, %v3955_v59 }
 0xedd   :  { %v2887_v4 = vmul.f32 -1.442695, %v3553_v42 }
 0xede   :  { %3669 = vtanh.f32 %v3554_v2  ;;  %v2888_v11 = vmul.f32 -1.442695, %v3554_v2 }
 0xedf   :  { %3671 = vpow2.f32 %v2887_v4 }
 0xee8   :  { %v3670_v39 = vpop.eup %3669 }
 0xee9   :  { %1189 = vrot.lane.b32.xlu1 %v3670_v39, %s3821_s26  ;;  %v3672_v46 = vpop.eup %3671 }
 0xeea   :  { %v1180_v48 = vadd.f32 1.0, %v3672_v46 }
 0xeec   :  { %3673 = vrcp.f32 %v1180_v48 }
 0xef6   :  { %v3674_v52 = vpop.eup %3673 }
 0xef7   :  { %v1187_v17 = vmul.f32 %v3674_v52, %v1086_v53 }
 0xf5b   :  { %v1190_v3 = vpop.permute.xlu1 %1189 }
 0xf5c   :  { %v1192_v13 = vmul.f32 %v3674_v52, %v1190_v3  ;;  %v1321_v52 = vld [vmem:[#allocation2] sm:$0xff]  ;;  %v1322_v3 = vld [vmem:[#allocation2 + $0x8] sm:$0xff] }
 0xf5e   :  { %1194 = vrot.lane.b32.xlu0 %v1192_v13, %s3821_s26  ;;  %v1323_v13 = vld [vmem:[#allocation2 + $0x10] sm:$0xff] }
 0xfd0   :  { %v1195_v8 = vpop.permute.xlu0 %1194 }
 0xfd1   :  { %v1197_v5 = vadd.f32 %v1195_v8, %v1187_v17  ;;  %v1324_v17 = vld [vmem:[#allocation2 + $0x18] sm:$0xff]  ;;  %v1325_v8 = vld [vmem:[#allocation2 + $0x20] sm:$0xff] }
 0xfd3   :  { %3675 = vtanh.f32 %v1197_v5 }
 0xfd4   :  { %3677 = vpow2.f32 %v2888_v11 }
 0xfdd   :  { %v3676_v10 = vpop.eup %3675 }
 0xfde   :  { %1200 = vrot.lane.b32.xlu1 %v3676_v10, %s3821_s26  ;;  %v3678_v12 = vpop.eup %3677 }
 0xfdf   :  { %v1181_v14 = vadd.f32 1.0, %v3678_v12  ;;  %v1603_v12 = vld [vmem:[%s4343_s2 + $0x1] ss:$0 sm:$0xff] }
 0xfe1   :  { %3679 = vrcp.f32 %v1181_v14 }
 0xfeb   :  { %v3680_v15 = vpop.eup %3679 }
0x1050   :  { %v1201_v16 = vpop.permute.xlu1 %1200 }
0x1051   :  { %v1203_v18 = vmul.f32 %v3680_v15, %v1201_v16 }
0x1053   :  { %1204 = vst.msk [vmem:[#allocation2 + $0x30] sm:$0xff] %vm532_vm4, %v1203_v18  ;;  %2889 = vmatmul.mubr.msk.f32.vlgmr.msra.gmra.mrb[16].mxu1 %vm539_vm5, %v1203_v18 }
0x105a   :  { %v1327_v10 = vld [vmem:[#allocation2 + $0x30] sm:$0xff] }
0x1126   :  { %v1278_v19 = vpop.f32.mrb[16].mxu1 }
0x1127   :  { %v1280_v21 = vpop.f32.mrb[17].mxu1  ;;  %v3555_v24 = vadd.f32 %v1278_v19, %v3903_v7 }
0x1128   :  { %v3556_v22 = vadd.f32 %v1280_v21, %v3955_v59 }
0x1129   :  { %v2890_v25 = vmul.f32 -1.442695, %v3555_v24 }
0x112a   :  { %3681 = vtanh.f32 %v3556_v22  ;;  %v2891_v7 = vmul.f32 -1.442695, %v3556_v22 }
0x112b   :  { %3683 = vpow2.f32 %v2890_v25 }
0x1134   :  { %v3682_v23 = vpop.eup %3681 }
0x1135   :  { %1300 = vrot.lane.b32.xlu0 %v3682_v23, %s3821_s26  ;;  %v3684_v26 = vpop.eup %3683 }
0x1136   :  { %v1291_v27 = vadd.f32 1.0, %v3684_v26 }
0x1138   :  { %3685 = vrcp.f32 %v1291_v27 }
0x1142   :  { %v3686_v28 = vpop.eup %3685 }
0x1143   :  { %v1298_v31 = vmul.f32 %v3686_v28, %v1197_v5  ;;  %v1326_v5 = vld [vmem:[#allocation2 + $0x28] sm:$0xff] }
0x11a7   :  { %v1301_v29 = vpop.permute.xlu0 %1300 }
0x11a8   :  { %v1303_v30 = vmul.f32 %v3686_v28, %v1301_v29 }
0x11aa   :  { %1305 = vrot.lane.b32.xlu1 %v1303_v30, %s3821_s26 }
0x121c   :  { %v1306_v32 = vpop.permute.xlu1 %1305 }
0x121d   :  { %v1308_v34 = vadd.f32 %v1306_v32, %v1298_v31 }
0x121f   :  { %3687 = vtanh.f32 %v1308_v34 }
0x1220   :  { %3689 = vpow2.f32 %v2891_v7 }
0x1229   :  { %v3688_v59 = vpop.eup %3687 }
0x122a   :  { %1311 = vrot.lane.b32.xlu0 %v3688_v59, %s3821_s26  ;;  %v3690_v36 = vpop.eup %3689 }
0x122b   :  { %v1292_v37 = vadd.f32 1.0, %v3690_v36 }
0x122d   :  { %3691 = vrcp.f32 %v1292_v37 }
0x122e   :  { %1206 = vrot.lane.b32.xlu0 %v1203_v18, %s3822_s29 }
0x1232   :  { %984 = vrot.lane.b32.xlu0 %v4071_v33, %s3822_s29  ;;  %v1329_v33 = vld [vmem:[#allocation4 + $0xa0] sm:$0xff] }
0x1236   :  { %762 = vrot.lane.b32.xlu0 %v4031_v44, %s3822_s29  ;;  %v1330_v44 = vld [vmem:[#allocation4 + $0xb0] sm:$0xff] }
0x1237   :  { %v3467_v49 = vpack.c.bf16 %v1330_v44, %v1329_v33  ;;  %v3692_v50 = vpop.eup %3691  ;;  %v4184_v33 = vpack.c.bf16 %v1615_v47, %v1614_v43 }
0x1239   :  { %3468 = vmatprep.subr.bf16.mxu0 %v3467_v49 }
0x123a   :  { %535 = vrot.lane.b32.xlu0 %v3991_v56, %s3822_s29 }
0x129c   :  { %v1312_v56 = vpop.permute.xlu0 %1311 }
0x129d   :  { %v1314_v35 = vmul.f32 %v3692_v50, %v1312_v56 }
0x129f   :  { %1315 = vst.msk [vmem:[#allocation2 + $0x38] sm:$0xff] %vm532_vm4, %v1314_v35  ;;  %1317 = vrot.lane.b32.xlu1 %v1314_v35, %s3822_s29 }
0x12a0   :  { %v1207_v51 = vpop.permute.xlu0 %1206 }
0x12a1   :  { %1209 = vst.msk [vmem:[#allocation3 + $0x8] sm:$0xff] %vm532_vm4, %v1207_v51 }
0x12a3   :  { %1095 = vrot.lane.b32.xlu1 %v4091_v62, %s3822_s29 }
0x12a4   :  { %v985_v53 = vpop.permute.xlu0 %984 }
0x12a5   :  { %987 = vst.msk [vmem:[#allocation3 + $0x18] sm:$0xff] %vm532_vm4, %v985_v53 }
0x12a6   :  { %v4159_v11 = vld [vmem:[#allocation2 + $0x38] sm:$0xff] }
0x12a7   :  { %873 = vrot.lane.b32.xlu1 %v4051_v9, %s3822_s29  ;;  %v3471_v9 = vpack.c.bf16 %v1332_v61, %v1331_v60 }
0x12a8   :  { %v763_v54 = vpop.permute.xlu0 %762  ;;  %v1334_v1 = vld [vmem:[#allocation3 + $0x8] sm:$0xff] }
0x12a9   :  { %765 = vst.msk [vmem:[#allocation3 + $0x28] sm:$0xff] %vm532_vm4, %v763_v54 }
0x12ab   :  { %651 = vrot.lane.b32.xlu1 %v4011_v20, %s3822_s29 }
0x12ac   :  { %v536_v55 = vpop.permute.xlu0 %535  ;;  %v1336_v39 = vld [vmem:[#allocation3 + $0x18] sm:$0xff] }
0x12ad   :  { %538 = vst.msk [vmem:[#allocation3 + $0x38] sm:$0xff] %vm532_vm4, %v536_v55 }
0x12b0   :  { %v1338_v4 = vld [vmem:[#allocation3 + $0x28] sm:$0xff] }
0x12b4   :  { %v4148_v48 = vld [vmem:[#allocation3 + $0x38] sm:$0xff] }
0x1311   :  { %v1318_v57 = vpop.permute.xlu1 %1317 }
0x1312   :  { %1320 = vst.msk [vmem:[#allocation3] sm:$0xff] %vm532_vm4, %v1318_v57 }
0x1315   :  { %v1096_v58 = vpop.permute.xlu1 %1095 }
0x1316   :  { %1098 = vst.msk [vmem:[#allocation3 + $0x10] sm:$0xff] %vm532_vm4, %v1096_v58 }
0x1319   :  { %v874_v62 = vpop.permute.xlu1 %873  ;;  %v1333_v63 = vld [vmem:[#allocation3] sm:$0xff] }
0x131a   :  { %876 = vst.msk [vmem:[#allocation3 + $0x20] sm:$0xff] %vm532_vm4, %v874_v62  ;;  %3132 = vmatprep.mubr.msk.f32.mxu0 %vm532_vm4, %v1333_v63 }
0x131b   :  { %3133 = vmatmul.mubr.msk.f32.vlgmr.msra.gmra.mrb[4].mxu0 %vm532_vm4, %v1334_v1 }
0x131c   :  { %3470 = vmatpush3.bf16.msra.mxu0 %v3467_v49 }
0x131d   :  { %v652_v20 = vpop.permute.xlu1 %651  ;;  %v1335_v2 = vld [vmem:[#allocation3 + $0x10] sm:$0xff]  ;;  %3472 = vmatprep.subr.bf16.mxu0 %v3471_v9 }
0x131e   :  { %654 = vst.msk [vmem:[#allocation3 + $0x30] sm:$0xff] %vm532_vm4, %v652_v20  ;;  %3135 = vmatprep.mubr.msk.f32.mxu0 %vm532_vm4, %v1335_v2 }
0x131f   :  { %3136 = vmatmul.mubr.msk.f32.gmra.mrb[6].mxu0 %vm532_vm4, %v1336_v39 }
0x1320   :  { %3474 = vmatpush3.bf16.msra.mxu0 %v3471_v9 }
0x1321   :  { %v1337_v42 = vld [vmem:[#allocation3 + $0x20] sm:$0xff]  ;;  %3475 = vmatprep.subr.bf16.mxu0 %v3820_v6 }
0x1322   :  { %3138 = vmatprep.mubr.msk.f32.mxu0 %vm532_vm4, %v1337_v42 }
0x1323   :  { %3139 = vmatmul.mubr.msk.f32.gmra.mrb[8].mxu0 %vm532_vm4, %v1338_v4 }
0x1325   :  { %v1339_v46 = vld [vmem:[#allocation3 + $0x30] sm:$0xff] }
0x1326   :  { %3141 = vmatprep.mubr.msk.f32.mxu0 %vm532_vm4, %v1339_v46 }
0x1327   :  { %3142 = vmatmul.mubr.msk.f32.gmra.mrb[10].mxu0 %vm532_vm4, %v4148_v48 }
0x1328   :  { %3152 = vmatprep.mubr.msk.f32.mxu0 %vm532_vm4, %v1321_v52 }
0x132b   :  { %3153 = vmatmul.mubr.msk.f32.vlgmr.msra.gmra.mrb[4].mxu0 %vm532_vm4, %v1322_v3 }
0x132c   :  { %3155 = vmatprep.mubr.msk.f32.mxu0 %vm532_vm4, %v1323_v13  ;;  %3477 = vmatpush3.bf16.msra.mxu0 %v4181_v45 }
0x132d   :  { %3478 = vmatprep.subr.bf16.mxu0 %v3820_v6 }
0x132f   :  { %3156 = vmatmul.mubr.msk.f32.gmra.mrb[6].mxu0 %vm532_vm4, %v1324_v17 }
0x1330   :  { %3158 = vmatprep.mubr.msk.f32.mxu0 %vm532_vm4, %v1325_v8  ;;  %3480 = vmatpush3.bf16.msra.mxu0 %v4184_v33 }
0x1331   :  { %3481 = vmatprep.subr.bf16.mxu0 %v3820_v6 }
0x1333   :  { %3159 = vmatmul.mubr.msk.f32.gmra.mrb[8].mxu0 %vm532_vm4, %v1326_v5 }
0x1334   :  { %3161 = vmatprep.mubr.msk.f32.mxu0 %vm532_vm4, %v1327_v10 }
0x1337   :  { %3162 = vmatmul.mubr.msk.f32.gmra.mrb[10].mxu0 %vm532_vm4, %v4159_v11 }
0x1338   :  { %3172 = vmatprep.mubr.msk.f32.mxu0 %vm3819_vm0, %v3818_v0 }
0x13fe   :  { %v3154_v14 = vpop.f32.mrb[4].mxu0 }
0x13ff   :  { %v1605_v15 = vadd.f32 %v3154_v14, %v1603_v12  ;;  %v1564_v16 = vpop.f32.mrb[5].mxu0 }
0x1400   :  { %v1604_v18 = vadd.f32 %v1603_v12, %v1564_v16 }
0x1402   :  { %3693 = vtanh.f32 %v1604_v18  ;;  %v3157_v19 = vpop.f32.mrb[6].mxu0  ;;  %v2908_v34 = vmul.f32 -1.442695, %v1604_v18 }
0x1403   :  { %v4168_v21 = vadd.f32 %v3157_v19, %v1603_v12  ;;  %v1574_v22 = vpop.f32.mrb[7].mxu0 }
0x1404   :  { %v4170_v23 = vadd.f32 %v1603_v12, %v1574_v22  ;;  %3695 = vpow2.f32 %v2908_v34 }
0x1406   :  { %v3160_v24 = vpop.f32.mrb[8].mxu0 }
0x1407   :  { %v4172_v25 = vadd.f32 %v3160_v24, %v1603_v12  ;;  %v1584_v26 = vpop.f32.mrb[9].mxu0 }
0x1408   :  { %v4174_v27 = vadd.f32 %v1603_v12, %v1584_v26 }
0x140a   :  { %v3163_v28 = vpop.f32.mrb[10].mxu0 }
0x140b   :  { %v4176_v29 = vadd.f32 %v3163_v28, %v1603_v12  ;;  %v1594_v30 = vpop.f32.mrb[11].mxu0 }
0x140c   :  { %v3694_v31 = vpop.eup %3693  ;;  %v4178_v32 = vadd.f32 %v1603_v12, %v1594_v30 }
0x140d   :  { %1624 = vrot.lane.b32.xlu1 %v3694_v31, %s3823_s5 }
0x140e   :  { %v3696_v59 = vpop.eup %3695 }
0x140f   :  { %v1619_v7 = vadd.f32 1.0, %v3696_v59 }
0x1411   :  { %3697 = vrcp.f32 %v1619_v7 }
0x141b   :  { %v3698_v36 = vpop.eup %3697 }
0x147f   :  { %v1625_v37 = vpop.permute.xlu1 %1624 }
0x1480   :  { %v1627_v38 = vmul.f32 %v3698_v36, %v1625_v37 }
0x1482   :  { %3699 = vtanh.f32 %v1627_v38 }
0x148c   :  { %v3700_v44 = vpop.eup %3699 }
0x148d   :  { %1630 = vrot.lane.b32.xlu0 %v3700_v44, %s3821_s26 }
0x14ff   :  { %v1631_v49 = vpop.permute.xlu0 %1630 }
0x1500   :  { %v1633_v50 = vmul.f32 %v3698_v36, %v1631_v49 }
0x1502   :  { %1635 = vrot.lane.b32.xlu1 %v1633_v50, %s3821_s26 }
0x1506   :  { %1718 = vrot.lane.b32.xlu1 %v1627_v38, %s3823_s5 }
0x1574   :  { %v1636_v56 = vpop.permute.xlu1 %1635 }
0x1575   :  { %3173 = vmatmul.mubr.msk.f32.vlgmr.msra.gmra.mrb[12].mxu0 %vm532_vm4, %v1636_v56 }
0x1576   :  { %3483 = vmatpush3.bf16.msra.mxu0 %v4181_v45  ;;  %3183 = vmatprep.mubr.msk.f32.mxu0 %vm3819_vm0, %v3818_v0 }
0x1577   :  { %3484 = vmatprep.subr.bf16.mxu0 %v3820_v6 }
0x1578   :  { %v1719_v63 = vpop.permute.xlu1 %1718 }
0x157a   :  { %3486 = vmatpush3.bf16.msra.mxu0 %v4184_v33 }
0x157b   :  { %3487 = vmatprep.subr.bf16.mxu0 %v3820_v6 }
0x1648   :  { %v1705_v35 = vpop.f32.mrb[12].mxu0 }
0x1649   :  { %v1709_v51 = vadd.f32 %v1705_v35, %v1605_v15  ;;  %v3174_v53 = vpop.f32.mrb[13].mxu0 }
0x164b   :  { %3701 = vtanh.f32 %v1709_v51  ;;  %v2910_v55 = vmul.f32 -1.442695, %v1709_v51 }
0x164d   :  { %3703 = vpow2.f32 %v2910_v55 }
0x1655   :  { %v3702_v54 = vpop.eup %3701 }
0x1656   :  { %1723 = vrot.lane.b32.xlu0 %v3702_v54, %s3823_s5 }
0x1657   :  { %v3704_v57 = vpop.eup %3703 }
0x1658   :  { %v1713_v58 = vadd.f32 1.0, %v3704_v57 }
0x165a   :  { %3705 = vrcp.f32 %v1713_v58 }
0x1664   :  { %v3706_v60 = vpop.eup %3705 }
0x1665   :  { %v1721_v9 = vmul.f32 %v3706_v60, %v1719_v63 }
0x16c8   :  { %v1724_v61 = vpop.permute.xlu0 %1723 }
0x16c9   :  { %v1726_v62 = vmul.f32 %v3706_v60, %v1724_v61 }
0x16cb   :  { %1728 = vrot.lane.b32.xlu0 %v1726_v62, %s3823_s5 }
0x173d   :  { %v1729_v1 = vpop.permute.xlu0 %1728 }
0x173e   :  { %v1731_v20 = vadd.f32 %v1729_v1, %v1721_v9 }
0x1740   :  { %3707 = vtanh.f32 %v1731_v20 }
0x174a   :  { %v3708_v2 = vpop.eup %3707 }
0x174b   :  { %1734 = vrot.lane.b32.xlu1 %v3708_v2, %s3823_s5 }
0x17bd   :  { %v1735_v39 = vpop.permute.xlu1 %1734 }
0x17be   :  { %v1737_v42 = vmul.f32 %v3706_v60, %v1735_v39 }
0x17c0   :  { %1739 = vrot.lane.b32.xlu0 %v1737_v42, %s3821_s26 }
0x1832   :  { %v1740_v4 = vpop.permute.xlu0 %1739 }
0x1833   :  { %3184 = vmatmul.mubr.msk.f32.vlgmr.msra.gmra.mrb[14].mxu0 %vm532_vm4, %v1740_v4 }
0x1834   :  { %3489 = vmatpush3.bf16.msra.mxu0 %v4181_v45  ;;  %3194 = vmatprep.mubr.msk.f32.mxu0 %vm3819_vm0, %v3818_v0 }
0x1835   :  { %3490 = vmatprep.subr.bf16.mxu0 %v3820_v6 }
0x1838   :  { %3492 = vmatpush3.bf16.msra.mxu0 %v4184_v33 }
0x1839   :  { %3493 = vmatprep.subr.bf16.mxu0 %v3820_v6 }
0x1906   :  { %v1809_v46 = vpop.f32.mrb[14].mxu0 }
0x1907   :  { %v1813_v52 = vadd.f32 %v1809_v46, %v4170_v23  ;;  %v3185_v3 = vpop.f32.mrb[15].mxu0 }
0x1909   :  { %3709 = vtanh.f32 %v1813_v52  ;;  %v2912_v17 = vmul.f32 -1.442695, %v1813_v52 }
0x190b   :  { %3711 = vpow2.f32 %v2912_v17 }
0x1913   :  { %v3710_v13 = vpop.eup %3709 }
0x1914   :  { %1823 = vrot.lane.b32.xlu1 %v3710_v13, %s3823_s5 }
0x1915   :  { %v3712_v8 = vpop.eup %3711 }
0x1916   :  { %v1817_v5 = vadd.f32 1.0, %v3712_v8 }
0x1918   :  { %3713 = vrcp.f32 %v1817_v5 }
0x1922   :  { %v3714_v10 = vpop.eup %3713 }
0x1923   :  { %v1821_v15 = vmul.f32 %v3714_v10, %v1731_v20 }
0x1986   :  { %v1824_v12 = vpop.permute.xlu1 %1823 }
0x1987   :  { %v1826_v14 = vmul.f32 %v3714_v10, %v1824_v12 }
0x1989   :  { %1828 = vrot.lane.b32.xlu0 %v1826_v14, %s3823_s5 }
0x19fb   :  { %v1829_v16 = vpop.permute.xlu0 %1828 }
0x19fc   :  { %v1831_v18 = vadd.f32 %v1829_v16, %v1821_v15 }
0x19fe   :  { %3715 = vtanh.f32 %v1831_v18 }
0x1a08   :  { %v3716_v19 = vpop.eup %3715 }
0x1a09   :  { %1834 = vrot.lane.b32.xlu1 %v3716_v19, %s3823_s5 }
0x1a7b   :  { %v1835_v22 = vpop.permute.xlu1 %1834 }
0x1a7c   :  { %v1837_v23 = vmul.f32 %v3714_v10, %v1835_v22 }
0x1a7e   :  { %1839 = vrot.lane.b32.xlu0 %v1837_v23, %s3821_s26 }
0x1af0   :  { %v1840_v24 = vpop.permute.xlu0 %1839 }
0x1af1   :  { %3195 = vmatmul.mubr.msk.f32.vlgmr.msra.gmra.mrb[16].mxu0 %vm532_vm4, %v1840_v24 }
0x1af2   :  { %3495 = vmatpush3.bf16.msra.mxu0 %v4181_v45  ;;  %3205 = vmatprep.mubr.msk.f32.mxu0 %vm3819_vm0, %v3818_v0 }
0x1af3   :  { %3496 = vmatprep.subr.bf16.mxu0 %v3820_v6 }
0x1af6   :  { %3498 = vmatpush3.bf16.msra.mxu0 %v4184_v33 }
0x1af7   :  { %3499 = vmatprep.subr.bf16.mxu0 %v3820_v6 }
0x1bc4   :  { %v1909_v26 = vpop.f32.mrb[16].mxu0 }
0x1bc5   :  { %v1913_v28 = vadd.f32 %v1909_v26, %v4168_v21  ;;  %v3196_v30 = vpop.f32.mrb[17].mxu0 }
0x1bc7   :  { %3717 = vtanh.f32 %v1913_v28  ;;  %v2914_v34 = vmul.f32 -1.442695, %v1913_v28 }
0x1bc9   :  { %3719 = vpow2.f32 %v2914_v34 }
0x1bd1   :  { %v3718_v31 = vpop.eup %3717 }
0x1bd2   :  { %1923 = vrot.lane.b32.xlu1 %v3718_v31, %s3823_s5 }
0x1bd3   :  { %v3720_v59 = vpop.eup %3719 }
0x1bd4   :  { %v1917_v7 = vadd.f32 1.0, %v3720_v59 }
0x1bd6   :  { %3721 = vrcp.f32 %v1917_v7 }
0x1be0   :  { %v3722_v36 = vpop.eup %3721 }
0x1be1   :  { %v1921_v40 = vmul.f32 %v3722_v36, %v1831_v18 }
0x1c44   :  { %v1924_v37 = vpop.permute.xlu1 %1923 }
0x1c45   :  { %v1926_v38 = vmul.f32 %v3722_v36, %v1924_v37  ;;  %v2342_v37 = vld [vmem:[#allocation4 + $0x1a0] sm:$0xff] }
0x1c47   :  { %1928 = vrot.lane.b32.xlu0 %v1926_v38, %s3823_s5  ;;  %v2343_v38 = vld [vmem:[#allocation4 + $0x1b0] sm:$0xff] }
0x1cb9   :  { %v1929_v41 = vpop.permute.xlu0 %1928 }
0x1cba   :  { %v1931_v43 = vadd.f32 %v1929_v41, %v1921_v40  ;;  %v3518_v40 = vpack.c.bf16 %v2343_v38, %v2342_v37  ;;  %v2344_v41 = vld [vmem:[#allocation4 + $0x1c0] sm:$0xff] }
0x1cbc   :  { %3723 = vtanh.f32 %v1931_v43 }
0x1cc6   :  { %v3724_v21 = vpop.eup %3723 }
0x1cc7   :  { %1934 = vrot.lane.b32.xlu1 %v3724_v21, %s3823_s5 }
0x1d39   :  { %v1935_v47 = vpop.permute.xlu1 %1934 }
0x1d3a   :  { %v1937_v44 = vmul.f32 %v3722_v36, %v1935_v47 }
0x1d3c   :  { %1939 = vrot.lane.b32.xlu0 %v1937_v44, %s3821_s26  ;;  %v2338_v44 = vld [vmem:[#allocation4 + $0x160] sm:$0xff] }
0x1dae   :  { %v1940_v49 = vpop.permute.xlu0 %1939 }
0x1daf   :  { %3206 = vmatmul.mubr.msk.f32.vlgmr.msra.gmra.mrb[18].mxu0 %vm532_vm4, %v1940_v49  ;;  %v2339_v49 = vld [vmem:[#allocation4 + $0x170] sm:$0xff] }
0x1db0   :  { %3501 = vmatpush3.bf16.msra.mxu0 %v4181_v45  ;;  %3216 = vmatprep.mubr.msk.f32.mxu0 %vm3819_vm0, %v3818_v0 }
0x1db1   :  { %3502 = vmatprep.subr.bf16.mxu0 %v3820_v6 }
0x1db4   :  { %3504 = vmatpush3.bf16.msra.mxu0 %v4184_v33 }
0x1db5   :  { %3505 = vmatprep.subr.bf16.mxu0 %v3820_v6 }
0x1e82   :  { %v2009_v50 = vpop.f32.mrb[18].mxu0 }
0x1e83   :  { %v2013_v56 = vadd.f32 %v2009_v50, %v4174_v27  ;;  %v3207_v35 = vpop.f32.mrb[19].mxu0  ;;  %v3524_v50 = vpack.c.bf16 %v2339_v49, %v2338_v44 }
0x1e84   :  { %v2341_v35 = vld [vmem:[#allocation4 + $0x190] sm:$0xff] }
0x1e85   :  { %3725 = vtanh.f32 %v2013_v56  ;;  %v2916_v53 = vmul.f32 -1.442695, %v2013_v56  ;;  %v2340_v56 = vld [vmem:[#allocation4 + $0x180] sm:$0xff] }
0x1e87   :  { %3727 = vpow2.f32 %v2916_v53 }
0x1e8f   :  { %v3726_v51 = vpop.eup %3725 }
0x1e90   :  { %2023 = vrot.lane.b32.xlu1 %v3726_v51, %s3823_s5  ;;  %v3527_v51 = vpack.c.bf16 %v2341_v35, %v2340_v56 }
0x1e91   :  { %v3728_v54 = vpop.eup %3727 }
0x1e92   :  { %v2017_v55 = vadd.f32 1.0, %v3728_v54 }
0x1e94   :  { %3729 = vrcp.f32 %v2017_v55 }
0x1e9e   :  { %v3730_v57 = vpop.eup %3729 }
0x1e9f   :  { %v2021_v61 = vmul.f32 %v3730_v57, %v1931_v43  ;;  %v2345_v43 = vld [vmem:[#allocation4 + $0x1d0] sm:$0xff] }
0x1ea0   :  { %v3521_v47 = vpack.c.bf16 %v2345_v43, %v2344_v41  ;;  %v2769_v43 = vld [vmem:[#allocation4 + $0x480] sm:$0xff] }
0x1f02   :  { %v2024_v58 = vpop.permute.xlu1 %2023 }
0x1f03   :  { %v2026_v60 = vmul.f32 %v3730_v57, %v2024_v58 }
0x1f05   :  { %2028 = vrot.lane.b32.xlu0 %v2026_v60, %s3823_s5 }
0x1f77   :  { %v2029_v62 = vpop.permute.xlu0 %2028 }
0x1f78   :  { %v2031_v63 = vadd.f32 %v2029_v62, %v2021_v61  ;;  %v2486_v61 = vld [vmem:[%s4343_s2 + $0x2] ss:$0 sm:$0xff] }
0x1f7a   :  { %3731 = vtanh.f32 %v2031_v63 }
0x1f84   :  { %v3732_v27 = vpop.eup %3731 }
0x1f85   :  { %2034 = vrot.lane.b32.xlu1 %v3732_v27, %s3823_s5 }
0x1ff7   :  { %v2035_v9 = vpop.permute.xlu1 %2034 }
0x1ff8   :  { %v2037_v1 = vmul.f32 %v3730_v57, %v2035_v9 }
0x1ffa   :  { %2039 = vrot.lane.b32.xlu0 %v2037_v1, %s3821_s26 }
0x206c   :  { %v2040_v20 = vpop.permute.xlu0 %2039 }
0x206d   :  { %3217 = vmatmul.mubr.msk.f32.vlgmr.msra.gmra.mrb[20].mxu0 %vm532_vm4, %v2040_v20 }
0x206e   :  { %3507 = vmatpush3.bf16.msra.mxu0 %v4181_v45  ;;  %3227 = vmatprep.mubr.msk.f32.mxu0 %vm3819_vm0, %v3818_v0 }
0x206f   :  { %3508 = vmatprep.subr.bf16.mxu0 %v3820_v6 }
0x2072   :  { %3510 = vmatpush3.bf16.msra.mxu0 %v4184_v33 }
0x2073   :  { %3511 = vmatprep.subr.bf16.mxu0 %v3820_v6 }
0x2140   :  { %v2109_v2 = vpop.f32.mrb[20].mxu0 }
0x2141   :  { %v2113_v39 = vadd.f32 %v2109_v2, %v4172_v25  ;;  %v3218_v42 = vpop.f32.mrb[21].mxu0 }
0x2143   :  { %3733 = vtanh.f32 %v2113_v39  ;;  %v2918_v46 = vmul.f32 -1.442695, %v2113_v39 }
0x2145   :  { %3735 = vpow2.f32 %v2918_v46 }
0x214d   :  { %v3734_v4 = vpop.eup %3733 }
0x214e   :  { %2123 = vrot.lane.b32.xlu1 %v3734_v4, %s3823_s5 }
0x214f   :  { %v3736_v52 = vpop.eup %3735 }
0x2150   :  { %v2117_v3 = vadd.f32 1.0, %v3736_v52 }
0x2152   :  { %3737 = vrcp.f32 %v2117_v3 }
0x215c   :  { %v3738_v13 = vpop.eup %3737 }
0x215d   :  { %v2121_v5 = vmul.f32 %v3738_v13, %v2031_v63 }
0x21c0   :  { %v2124_v17 = vpop.permute.xlu1 %2123 }
0x21c1   :  { %v2126_v8 = vmul.f32 %v3738_v13, %v2124_v17 }
0x21c3   :  { %2128 = vrot.lane.b32.xlu0 %v2126_v8, %s3823_s5 }
0x2235   :  { %v2129_v10 = vpop.permute.xlu0 %2128 }
0x2236   :  { %v2131_v12 = vadd.f32 %v2129_v10, %v2121_v5 }
0x2238   :  { %3739 = vtanh.f32 %v2131_v12 }
0x2242   :  { %v3740_v25 = vpop.eup %3739 }
0x2243   :  { %2134 = vrot.lane.b32.xlu1 %v3740_v25, %s3823_s5  ;;  %v2511_v25 = vld [vmem:[#allocation4 + $0x230] sm:$0xff] }
0x22b5   :  { %v2135_v14 = vpop.permute.xlu1 %2134 }
0x22b6   :  { %v2137_v15 = vmul.f32 %v3738_v13, %v2135_v14  ;;  %v2512_v14 = vld [vmem:[#allocation4 + $0x240] sm:$0xff] }
0x22b8   :  { %2139 = vrot.lane.b32.xlu0 %v2137_v15, %s3821_s26 }
0x232a   :  { %v2140_v16 = vpop.permute.xlu0 %2139 }
0x232b   :  { %3228 = vmatmul.mubr.msk.f32.vlgmr.msra.gmra.mrb[22].mxu0 %vm532_vm4, %v2140_v16  ;;  %v2513_v16 = vld [vmem:[#allocation4 + $0x250] sm:$0xff] }
0x232c   :  { %3513 = vmatpush3.bf16.msra.mxu0 %v4181_v45  ;;  %3238 = vmatprep.mubr.msk.f32.mxu0 %vm3819_vm0, %v3818_v0 }
0x232d   :  { %3514 = vmatprep.subr.bf16.mxu0 %v3820_v6 }
0x2330   :  { %3516 = vmatpush3.bf16.msra.mxu0 %v4184_v33 }
0x2331   :  { %3517 = vmatprep.subr.bf16.mxu0 %v3820_v6 }
0x23fe   :  { %v2209_v18 = vpop.f32.mrb[22].mxu0 }
0x23ff   :  { %v2213_v19 = vadd.f32 %v2209_v18, %v4178_v32  ;;  %v3229_v22 = vpop.f32.mrb[23].mxu0  ;;  %v3533_v18 = vpack.c.bf16 %v2513_v16, %v2512_v14 }
0x2401   :  { %3741 = vtanh.f32 %v2213_v19  ;;  %v2920_v24 = vmul.f32 -1.442695, %v2213_v19 }
0x2403   :  { %3743 = vpow2.f32 %v2920_v24 }
0x240b   :  { %v3742_v23 = vpop.eup %3741 }
0x240c   :  { %2223 = vrot.lane.b32.xlu1 %v3742_v23, %s3823_s5 }
0x240d   :  { %v3744_v45 = vpop.eup %3743 }
0x240e   :  { %v2217_v26 = vadd.f32 1.0, %v3744_v45 }
0x2410   :  { %3745 = vrcp.f32 %v2217_v26  ;;  %v2506_v26 = vld [vmem:[#allocation4 + $0x1e0] sm:$0xff] }
0x241a   :  { %v3746_v28 = vpop.eup %3745 }
0x241b   :  { %v2221_v33 = vmul.f32 %v3746_v28, %v2131_v12  ;;  %v2510_v12 = vld [vmem:[#allocation4 + $0x220] sm:$0xff] }
0x241c   :  { %v3530_v15 = vpack.c.bf16 %v2511_v25, %v2510_v12 }
0x247e   :  { %v2224_v30 = vpop.permute.xlu1 %2223 }
0x247f   :  { %v2226_v31 = vmul.f32 %v3746_v28, %v2224_v30 }
0x2481   :  { %2228 = vrot.lane.b32.xlu0 %v2226_v31, %s3823_s5  ;;  %v2508_v31 = vld [vmem:[#allocation4 + $0x200] sm:$0xff] }
0x24f3   :  { %v2229_v34 = vpop.permute.xlu0 %2228 }
0x24f4   :  { %v4261_v59 = vadd.f32 %v2229_v34, %v2221_v33  ;;  %v2509_v33 = vld [vmem:[#allocation4 + $0x210] sm:$0xff] }
0x24f6   :  { %3747 = vtanh.f32 %v4261_v59 }
0x2500   :  { %v3748_v32 = vpop.eup %3747 }
0x2501   :  { %2234 = vrot.lane.b32.xlu1 %v3748_v32, %s3823_s5 }
0x2573   :  { %v2235_v7 = vpop.permute.xlu1 %2234 }
0x2574   :  { %v2237_v36 = vmul.f32 %v3746_v28, %v2235_v7  ;;  %v2507_v28 = vld [vmem:[#allocation4 + $0x1f0] sm:$0xff] }
0x2575   :  { %v3536_v30 = vpack.c.bf16 %v2507_v28, %v2506_v26  ;;  %v2667_v7 = vld [vmem:[#allocation4 + $0x470] sm:$0xff] }
0x2576   :  { %2239 = vrot.lane.b32.xlu0 %v2237_v36, %s3821_s26  ;;  %v271_v36 = vld [vmem:[%s4343_s2 + $0x12] ss:$0 sm:$0xff] }
0x25e8   :  { %v2240_v21 = vpop.permute.xlu0 %2239 }
0x25e9   :  { %3239 = vmatmul.mubr.msk.f32.vlgmr.msra.gmra.mrb[24].mxu0 %vm532_vm4, %v2240_v21  ;;  %v2668_v21 = vld [vmem:[%s4343_s2 + $0x13] ss:$0 sm:$0xff] }
0x25ea   :  { %3519 = vmatpush3.bf16.msra.mxu0 %v3518_v40  ;;  %3249 = vmatprep.mubr.msk.f32.mxu0 %vm3819_vm0, %v3818_v0 }
0x25eb   :  { %3520 = vmatprep.subr.bf16.mxu0 %v3820_v6 }
0x25ee   :  { %3522 = vmatpush3.bf16.msra.mxu0 %v3521_v47 }
0x25ef   :  { %3523 = vmatprep.subr.bf16.mxu0 %v3820_v6 }
0x25f1   :  { %3250 = vmatmul.mubr.msk.f32.vlgmr.msra.gmra.mrb[26].mxu0 %vm532_vm4, %v4148_v48 }
0x25f2   :  { %3525 = vmatpush3.bf16.msra.mxu0 %v3524_v50  ;;  %3260 = vmatprep.mubr.msk.f32.mxu0 %vm3819_vm0, %v3818_v0 }
0x25f3   :  { %3526 = vmatprep.subr.bf16.mxu0 %v3820_v6 }
0x25f6   :  { %3528 = vmatpush3.bf16.msra.mxu0 %v3527_v51 }
0x25f7   :  { %3529 = vmatprep.subr.bf16.mxu0 %v3820_v6 }
0x25f9   :  { %3261 = vmatmul.mubr.msk.f32.vlgmr.msra.gmra.mrb[28].mxu0 %vm532_vm4, %v4159_v11 }
0x25fa   :  { %3271 = vmatprep.mubr.msk.f32.mxu0 %vm3819_vm0, %v3818_v0  ;;  %3531 = vmatpush3.bf16.msra.mxu0 %v3530_v15 }
0x25fb   :  { %3532 = vmatprep.subr.bf16.mxu0 %v3820_v6 }
0x25fe   :  { %3534 = vmatpush3.bf16.msra.mxu0 %v3533_v18 }
0x25ff   :  { %3535 = vmatprep.subr.bf16.mxu0 %v3820_v6 }
0x26bc   :  { %v2309_v53 = vpop.f32.mrb[24].mxu0 }
0x26bd   :  { %v2313_v54 = vadd.f32 %v2309_v53, %v4176_v29  ;;  %v3240_v48 = vpop.f32.mrb[25].mxu0 }
0x26bf   :  { %3749 = vtanh.f32 %v2313_v54  ;;  %v2922_v29 = vmul.f32 -1.442695, %v2313_v54 }
0x26c4   :  { %v2412_v55 = vpop.f32.mrb[26].mxu0 }
0x26c5   :  { %v3251_v57 = vpop.f32.mrb[27].mxu0 }
0x26c9   :  { %v3750_v58 = vpop.eup %3749 }
0x26ca   :  { %2323 = vrot.lane.b32.xlu1 %v3750_v58, %s3823_s5 }
0x26cc   :  { %v2482_v60 = vpop.f32.mrb[28].mxu0 }
0x26cd   :  { %v2483_v62 = vadd.f32 %v2482_v60, %v2412_v55  ;;  %v3262_v11 = vpop.f32.mrb[29].mxu0 }
0x26cf   :  { %v2487_v63 = vadd.f32 %v2486_v61, %v2483_v62 }
0x26d1   :  { %3751 = vtanh.f32 %v2487_v63  ;;  %v2925_v20 = vmul.f32 -1.442695, %v2487_v63 }
0x26d2   :  { %3753 = vpow2.f32 %v2922_v29 }
0x26db   :  { %v3752_v27 = vpop.eup %3751 }
0x26dc   :  { %2496 = vrot.lane.b32.xlu0 %v3752_v27, %s3823_s5  ;;  %v3754_v9 = vpop.eup %3753 }
0x26dd   :  { %v2317_v1 = vadd.f32 1.0, %v3754_v9 }
0x26df   :  { %3755 = vrcp.f32 %v2317_v1 }
0x26e0   :  { %3757 = vpow2.f32 %v2925_v20  ;;  %v2742_v20 = vld [vmem:[%s4343_s2 + $0x14] ss:$0 sm:$0xff] }
0x26e9   :  { %v3756_v2 = vpop.eup %3755 }
0x26ea   :  { %v3758_v42 = vpop.eup %3757  ;;  %v2321_v8 = vmul.f32 %v3756_v2, %v4261_v59  ;;  %v3539_v59 = vpack.c.bf16 %v2509_v33, %v2508_v31 }
0x26eb   :  { %v2491_v46 = vadd.f32 1.0, %v3758_v42 }
0x26ed   :  { %3759 = vrcp.f32 %v2491_v46 }
0x26f7   :  { %v3760_v52 = vpop.eup %3759 }
0x273c   :  { %v2324_v39 = vpop.permute.xlu1 %2323 }
0x273d   :  { %v2326_v4 = vmul.f32 %v3756_v2, %v2324_v39  ;;  %v2743_v39 = vld [vmem:[%s4343_s2 + $0x15] ss:$0 sm:$0xff] }
0x273f   :  { %2328 = vrot.lane.b32.xlu1 %v2326_v4, %s3823_s5 }
0x274e   :  { %v2497_v3 = vpop.permute.xlu0 %2496 }
0x274f   :  { %v2499_v13 = vmul.f32 %v3760_v52, %v2497_v3 }
0x2751   :  { %3761 = vtanh.f32 %v2499_v13 }
0x275b   :  { %v3762_v17 = vpop.eup %3761 }
0x275c   :  { %2502 = vrot.lane.b32.xlu0 %v3762_v17, %s3821_s26 }
0x27b1   :  { %v2329_v5 = vpop.permute.xlu1 %2328 }
0x27b2   :  { %v2331_v10 = vadd.f32 %v2329_v5, %v2321_v8 }
0x27b4   :  { %3763 = vtanh.f32 %v2331_v10 }
0x27be   :  { %v3764_v19 = vpop.eup %3763 }
0x27bf   :  { %2334 = vrot.lane.b32.xlu1 %v3764_v19, %s3823_s5 }
0x27ce   :  { %v2503_v22 = vpop.permute.xlu0 %2502 }
0x27cf   :  { %v2505_v23 = vmul.f32 %v3760_v52, %v2503_v22  ;;  %v2770_v52 = vld [vmem:[%s4343_s2 + $0x16] ss:$0 sm:$0xff] }
0x27d1   :  { %2515 = vrot.lane.b32.xlu0 %v2505_v23, %s3821_s26 }
0x2831   :  { %v2335_v24 = vpop.permute.xlu1 %2334 }
0x2832   :  { %v2337_v45 = vmul.f32 %v3756_v2, %v2335_v24 }
0x2834   :  { %2590 = vrot.lane.b32.xlu1 %v2337_v45, %s3821_s26 }
0x2843   :  { %v2516_v34 = vpop.permute.xlu0 %2515 }
0x2844   :  { %3272 = vmatmul.mubr.msk.f32.vlgmr.msra.gmra.mrb[2].mxu0 %vm532_vm4, %v2516_v34 }
0x2845   :  { %3537 = vmatpush3.bf16.msra.mxu0 %v3536_v30  ;;  %3282 = vmatprep.mubr.msk.f32.mxu0 %vm3819_vm0, %v3818_v0 }
0x2846   :  { %3538 = vmatprep.subr.bf16.mxu0 %v3820_v6  ;;  %v2664_v6 = vld [vmem:[%s4343_s2 + $0x3] ss:$0 sm:$0xff] }
0x2849   :  { %3540 = vmatpush3.bf16.msra.mxu0 %v3539_v59 }
0x284a   :  { %3285 = vmatprep.subr.mxu0 %v3818_v0 }
0x28a6   :  { %v2591_v32 = vpop.permute.xlu1 %2590 }
0x28a7   :  { %3283 = vmatmul.mubr.msk.f32.vlgmr.msra.gmra.mrb[2].mxu0 %vm532_vm4, %v2591_v32 }
0x28a8   :  { %3287 = vmatprep.mubr.msk.f32.mxu0 %vm3819_vm0, %v3818_v0  ;;  %3286 = vmatpush3.msra.mxu0 %v2667_v7 }
0x28a9   :  { %3290 = vmatprep.subr.mxu0 %v3818_v0 }
0x297a   :  { %v2660_v37 = vpop.f32.mrb[2].mxu0 }
0x297b   :  { %v3541_v38 = vadd.f32 %v2660_v37, %v271_v36  ;;  %v3284_v40 = vpop.f32.mrb[3].mxu0 }
0x297d   :  { %v3542_v41 = vadd.f32 %v3541_v38, %v2664_v6 }
0x297f   :  { %3288 = vmatmul.mubr.msk.f32.vlgmr.msra.gmra.mrb[30].mxu0 %vm40_vm1, %v3542_v41 }
0x2980   :  { %3292 = vmatprep.mubr.msk.f32.mxu0 %vm3819_vm0, %v3818_v0  ;;  %3291 = vmatpush3.msra.mxu0 %v2769_v43 }
0x2a52   :  { %v2738_v47 = vpop.f32.mrb[30].mxu0 }
0x2a53   :  { %v2739_v44 = vadd.f32 %v2738_v47, %v2668_v21  ;;  %v3289_v49 = vpop.f32.mrb[31].mxu0 }
0x2a55   :  { %v2745_v50 = vsel %vm2744_vm6, %v2739_v44, 0.0 }
0x2a56   :  { %v2746_v56 = vrot.slane %v2745_v50, 4 }
0x2a58   :  { %v2747_v35 = vadd.f32 %v2746_v56, %v2745_v50 }
0x2a5a   :  { %v2748_v51 = vrot.slane %v2747_v35, 2 }
0x2a5c   :  { %v2749_v53 = vadd.f32 %v2748_v51, %v2747_v35 }
0x2a5e   :  { %v2750_v54 = vrot.slane %v2749_v53, 1 }
0x2a60   :  { %v2751_v48 = vadd.f32 %v2750_v54, %v2749_v53 }
0x2a62   :  { %v2752_v55 = vmul.f32 0.25, %v2751_v48 }
0x2a64   :  { %v2753_v0 = vsub.f32 %v2739_v44, %v2752_v55 }
0x2a66   :  { %v2754_v57 = vmul.f32 %v2753_v0, %v2753_v0 }
0x2a68   :  { %v2755_v58 = vsel %vm2744_vm6, %v2754_v57, 0.0 }
0x2a69   :  { %v2756_v60 = vrot.slane %v2755_v58, 4 }
0x2a6b   :  { %v2757_v61 = vadd.f32 %v2756_v60, %v2755_v58 }
0x2a6d   :  { %v2758_v62 = vrot.slane %v2757_v61, 2 }
0x2a6f   :  { %v2759_v11 = vadd.f32 %v2758_v62, %v2757_v61 }
0x2a71   :  { %v2760_v63 = vrot.slane %v2759_v11, 1 }
0x2a73   :  { %v2761_v27 = vadd.f32 %v2760_v63, %v2759_v11 }
0x2a75   :  { %v2762_v29 = vmul.f32 0.25, %v2761_v27 }
0x2a77   :  { %v2763_v9 = vadd.f32 1e-05, %v2762_v29 }
0x2a79   :  { %3765 = vrsqrt.f32 %v2763_v9 }
0x2a83   :  { %v3766_v1 = vpop.eup %3765 }
0x2a84   :  { %v2765_v2 = vmul.f32 %v3766_v1, %v2753_v0 }
0x2a86   :  { %v2766_v42 = vmul.f32 %v2765_v2, %v2742_v20 }
0x2a88   :  { %v2767_v4 = vadd.f32 %v2766_v42, %v2743_v39 }
0x2a8a   :  { %v2768_v46 = vmax.f32 %v2767_v4, 0.0 }
0x2a8c   :  { %3293 = vmatmul.mubr.msk.f32.vlgmr.msra.gmra.mrb[32].mxu0 %vm40_vm1, %v2768_v46 }
0x2b5f   :  { %v2840_v3 = vpop.f32.mrb[32].mxu0 }
0x2b60   :  { %v2841_v13 = vadd.f32 %v2840_v3, %v2770_v52  ;;  %v3294_v17 = vpop.f32.mrb[33].mxu0 }
0x2b62   :  { %2844 = vst.msk [vmem:[#allocation7] sm:$0xf] %vm2744_vm6, %v2841_v13 }
0x2b63   :  { %3800 = shalt.err (!%p3797_p12)
}
0x2b64   :  { %s3801_s25 = scalar_lea.hbm %s4344_s3, 64 }
0x2b65   :  { %p3802_p13 = scmp.ne.s32.totalorder %s4344_s3, %s3801_s25  ;;  %p3805_p0 = scmp.lt.u32.totalorder %s3801_s25, %s4344_s3 }
0x2b67   :  { %p3807_p1 = pnand %p3805_p0, %p3802_p13 }
0x2b69   :  { %3810 = shalt.err (!%p3807_p1)
}
0x2b6a   :  { %2854 = dma.vmem_to_hbm [thread:$0]  %s2852_s21, 64, %s4344_s3, [#allocation6]  }
0x2b6b   :  { %3813 = dma.done.wait [#allocation6], 64  }
0x2b6c   :  { %3814 = vsyncadd [#allocation6], 4294967232 }
0x2b6d   :  { %2858 = vsyncpa [#allocation5], 1 }
0x2b6e   :  { %2859 = vsyncpa [#allocation6], 1 }

</bundles_post_ra>
